<compile_context>
chip_gen: v7x
topology: tpu7x:2x2x1
jax: 0.10.0
libtpu: 0.0.40
codegen_flags: <defaults>
</compile_context>

<pallas_src>
import math

import jax
import jax.numpy as jnp
from jax.experimental import pallas as pl
from jax.experimental.pallas import tpu as pltpu


def _make_kernel(Ks: int, c_in: int, c_out: int, out_dtype):
    """Kernel for one (c_in, N, Gt) channel-separated column tile of X.

    Refs:
      l_ref : (N, N)            f32   graph operator L
      x_ref : (c_in, N, Gt)     any   channel-separated tile of X (upcast on load)
      w_ref : (Ks*c_in*c_out,)  f32 SMEM  W2[k,j,o] at index (k*c_in + j)*c_out + o
      b_ref : (c_out,)          f32 SMEM  bias (zeros if disabled)
      o_ref : (c_out, N, Gt)    f32   output tile, out[o, n, g]
    """

    def kernel(l_ref, x_ref, w_ref, b_ref, o_ref):
        L = l_ref[...]
        L2 = L + L                       # fold the Chebyshev 2x into the operator

        # Chebyshev recursion per input channel, kept entirely in f32 (the
        # 2*L@x - x_prev chain is rounding-sensitive).  MXU sees c_in*(Ks-1)
        # small (N, N) @ (N, Gt) matmuls.
        cheb = []                        # cheb[j][k] : (N, Gt) f32
        for j in range(c_in):
            x0 = x_ref[j].astype(jnp.float32)
            ch = [x0]
            if Ks >= 2:
                ch.append(jnp.dot(L, x0, preferred_element_type=jnp.float32))
                for k in range(2, Ks):
                    ch.append(jnp.dot(L2, ch[k - 1],
                                      preferred_element_type=jnp.float32)
                              - ch[k - 2])
            cheb.append(ch)

        # (Ks*c_in -> c_out) projection as scalar-broadcast FMAs on the VPU.
        # Weights come from SMEM scalars; no lane shuffles, write-once output.
        # NOTE: for very wide channel counts (c_in*c_out >> 100) the folded
        # combined-operator matmul form (sum_k W2[k,j,o] * T_k(L)) is preferable
        # to this static unroll.
        for o in range(c_out):
            acc = None
            for k in range(Ks):
                for j in range(c_in):
                    w = w_ref[(k * c_in + j) * c_out + o]
                    term = cheb[j][k] * w
                    acc = term if acc is None else acc + term
            o_ref[o] = (acc + b_ref[o]).astype(out_dtype)

    return kernel


def _per_col_bytes(N, c_in, c_out, Ks, in_itemsize):
    # VMEM bytes per G-column of tile: double-buffered input tile, double-
    # buffered output tile, live Chebyshev temporaries, small slack.
    return N * (2 * c_in * in_itemsize + 2 * c_out * 4 + Ks * c_in * 4 + 8)


def _choose_tile_g(G, N, c_in, c_out, Ks, in_itemsize, target_tile_g, vmem_budget):
    """Pick the per-step column-tile width Gt (and padded G).

    Constraints:
      * Gt is a multiple of 128 (lane-dense blocks) or equals G (full-dim rule).
      * Double-buffered in/out tiles + live Chebyshev temporaries + L fit in
        `vmem_budget` (raise otherwise — never silently clamp).
    Preference: no padding (no extra HBM pad copy) > even tile count (balanced
    TC0/TC1 split on v7x) > fewer grid steps.
    """
    per_col = _per_col_bytes(N, c_in, c_out, Ks, in_itemsize)
    fixed = 2 * N * N * 4 + (2 << 20)            # double-buffered L + compiler slack
    max_cols = (vmem_budget - fixed) // per_col

    candidates = []
    if 0 < G <= max_cols and G <= max(target_tile_g, 128):
        candidates.append((G, 1))                # single full tile, no padding
    max_tile = (min(target_tile_g, max_cols) // 128) * 128
    for tile in range(max_tile, 127, -128):
        candidates.append((tile, -(-G // tile)))
    if not candidates:
        if 0 < G <= max_cols:
            candidates.append((G, 1))
        else:
            raise ValueError(
                f"VMEM budget {vmem_budget} too small for N={N}, c_in={c_in}, "
                f"c_out={c_out}, Ks={Ks}; shrink the problem or raise the budget.")

    def score(cand):
        tile, n = cand
        pad = n * tile - G
        odd = 1 if (n > 1 and n % 2 == 1) else 0
        return (pad, odd, n)

    tile, n = min(candidates, key=score)
    return tile, n * tile


def local_conv_forward(x, localconv_matrix, weight, bias, Ks, c_in, c_out,
                       *, target_tile_g=2048):
    """JAX/Pallas forward matching LocalConv.forward.  Returns (N*B*T, c_out) f32."""
    B, cin, T, n_vertex = x.shape
    if cin != c_in:
        raise ValueError(f"channel mismatch: {cin} vs {c_in}")
    if Ks < 1:
        raise ValueError(f"Ks must be a positive integer, got {Ks}")

    N = n_vertex
    G = B * T                       # column groups of the module's raw reshape
    M = G * c_in

    # --- glue: the module's raw row-major reshape, then channel separation ---
    # X[n, g*c_in + j] -> Xc[j, n, g].  The reshape is free; the (2,0,1)
    # transpose is the single wrapper-side copy of X.  X keeps its incoming
    # dtype (bf16 welcome); the kernel upcasts to f32 on load.
    xc = jnp.transpose(x.reshape(N, G, c_in), (2, 0, 1))        # (c_in, N, G)

    # Effective per-(k, j) weight: x_flat column j*Ks + k multiplies
    # weight.view(Ks*c_in, c_out) row j*Ks + k (faithful to the module's views).
    w_flat = weight.reshape(Ks * c_in, c_out).astype(jnp.float32)
    W2 = jnp.transpose(w_flat.reshape(c_in, Ks, c_out), (1, 0, 2))  # (Ks, c_in, c_out)
    w_lin = W2.reshape(Ks * c_in * c_out)                            # SMEM scalar table
    b_vec = (jnp.zeros((c_out,), jnp.float32) if bias is None
             else bias.astype(jnp.float32).reshape(c_out))

    # --- generation-aware VMEM budget (<= ~40 MiB on v7x, ~80 MiB on 128 MiB parts) ---
    try:
        vmem_cap = int(pltpu.get_tpu_info().vmem_capacity_bytes)
    except Exception:
        vmem_cap = 64 << 20                      # conservative fallback: v7x per-TC VMEM
    vmem_budget = (vmem_cap * 5) // 8

    in_itemsize = jnp.dtype(x.dtype).itemsize
    tile_g, g_pad = _choose_tile_g(G, N, c_in, c_out, Ks, in_itemsize,
                                   target_tile_g, vmem_budget)
    if g_pad != G:
        # TODO(synk): a masked last tile (pl.BoundedSlice) would avoid this pad copy.
        xc = jnp.pad(xc, ((0, 0), (0, 0), (0, g_pad - G)))
    num_tiles = g_pad // tile_g

    L = localconv_matrix.astype(jnp.float32)                     # (N, N)

    per_col = _per_col_bytes(N, c_in, c_out, Ks, in_itemsize)
    need = 2 * N * N * 4 + (2 << 20) + tile_g * per_col
    vmem_limit = int(min(vmem_budget, max(need + (8 << 20), 32 << 20)))

    mxu_flops = c_in * max(Ks - 1, 0) * 2 * N * N * g_pad        # recursion matmuls
    vpu_flops = Ks * c_in * c_out * 2 * N * g_pad                # projection FMAs
    bytes_accessed = int(xc.size * in_itemsize + L.size * 4 + w_lin.size * 4
                         + b_vec.size * 4 + c_out * N * g_pad * 4)

    out3 = pl.pallas_call(
        _make_kernel(Ks, c_in, c_out, jnp.float32),
        out_shape=jax.ShapeDtypeStruct((c_out, N, g_pad), jnp.float32),
        grid=(num_tiles,),
        in_specs=[
            pl.BlockSpec((N, N), lambda i: (0, 0)),                   # L (tiny, resident)
            pl.BlockSpec((c_in, N, tile_g), lambda i: (0, 0, i)),     # X tile (pipelined)
            pl.BlockSpec(memory_space=pltpu.MemorySpace.SMEM),        # weight scalars
            pl.BlockSpec(memory_space=pltpu.MemorySpace.SMEM),        # bias scalars
        ],
        out_specs=pl.BlockSpec((c_out, N, tile_g), lambda i: (0, 0, i)),  # lane-dense
        compiler_params=pltpu.CompilerParams(
            dimension_semantics=("parallel",),       # shard tiles across TCs on v7x
            vmem_limit_bytes=vmem_limit),
        cost_estimate=pl.CostEstimate(flops=mxu_flops + vpu_flops,
                                      transcendentals=0,
                                      bytes_accessed=bytes_accessed),
    )(L, xc, w_lin, b_vec)

    if g_pad != G:
        out3 = out3[:, :, :G]
    # (c_out, N, G) -> (N, G, c_out) -> (N*B*T, c_out): the module's output view.
    return jnp.transpose(out3, (1, 2, 0)).reshape(N * G, c_out)


def _reference(x, L, weight, bias, Ks, c_in, c_out):
    """Pure-JAX reference mirroring the PyTorch forward, for verification."""
    B, cin, T, N = x.shape
    xr = x.reshape(N, -1).astype(jnp.float32)
    Lf = L.astype(jnp.float32)
    x_list = [xr]
    if Ks >= 2:
        x_list.append(Lf @ xr)
        for k in range(2, Ks):
            x_list.append(2.0 * (Lf @ x_list[k - 1]) - x_list[k - 2])
    x_tensor = jnp.stack(x_list, axis=2)
    out = x_tensor.reshape(-1, Ks * c_in) @ weight.reshape(Ks * c_in, c_out).astype(jnp.float32)
    if bias is not None:
        out = out + bias
    return out


if __name__ == "__main__":
    # Small shapes consistent with the module's forward.  B*T = 256 column
    # groups, so target_tile_g=128 exercises a 2-step pipelined grid with an
    # even tile count (balanced across v7x's two TensorCores) and zero padding.
    B, c_in, T, n_vertex = 2, 4, 128, 16
    Ks, c_out = 3, 8
    enable_bias = True

    key = jax.random.PRNGKey(0)
    k_x, k_L, k_w, k_b = jax.random.split(key, 4)

    x = jax.random.normal(k_x, (B, c_in, T, n_vertex), dtype=jnp.float32)
    localconv_matrix = (jax.random.uniform(k_L, (n_vertex, n_vertex),
                                           dtype=jnp.float32) - 0.5) / float(n_vertex)

    # weight (Ks, c_in, c_out): kaiming_uniform-like (relu path in the module)
    fan_in = c_in * c_out
    bound_w = math.sqrt(2.0) * math.sqrt(3.0 / fan_in)
    weight = jax.random.uniform(k_w, (Ks, c_in, c_out), dtype=jnp.float32,
                                minval=-bound_w, maxval=bound_w)
    if enable_bias:
        stdv_b = 1.0 / math.sqrt(c_out)
        bias = jax.random.uniform(k_b, (c_out,), dtype=jnp.float32,
                                  minval=-stdv_b, maxval=stdv_b)
    else:
        bias = None

    out = local_conv_forward(x, localconv_matrix, weight, bias, Ks, c_in, c_out,
                             target_tile_g=128)
    out = jax.block_until_ready(out)

    ref = _reference(x, localconv_matrix, weight, bias, Ks, c_in, c_out)
    assert out.shape == (n_vertex * B * T, c_out), out.shape
    assert jnp.allclose(out, ref, atol=1e-4, rtol=1e-4), "mismatch vs reference"

    print("KERNEL_OK")
</pallas_src>

<mosaic_0001>
module attributes {stable_mosaic.version = 11 : i64} {
  func.func @kernel(%arg0: i32, %arg1: memref<16x16xf32, #tpu.memory_space<vmem>>, %arg2: memref<4x16x128xf32, #tpu.memory_space<vmem>>, %arg3: memref<96xf32, #tpu.memory_space<smem>>, %arg4: memref<8xf32, #tpu.memory_space<smem>>, %arg5: memref<8x16x128xf32, #tpu.memory_space<vmem>>) attributes {dimension_semantics = [#tpu.dimension_semantics<parallel>], iteration_bounds = array<i64: 2>, scalar_prefetch = 0 : i64, scratch_operands = 0 : i64, tpu.core_type = #tpu.core_type<tc>, window_params = [{pipeline_mode = #tpu.pipeline_mode<synchronous>, transform_indices = @transform_0, window_bounds = array<i64: 16, 16>}, {transform_indices = @transform_1, window_bounds = array<i64: 4, 16, 128>}, {transform_indices = @transform_2, window_bounds = array<i64: 96>}, {transform_indices = @transform_3, window_bounds = array<i64: 8>}, {transform_indices = @transform_4, window_bounds = array<i64: 8, 16, 128>}]} {
    %c0 = arith.constant 0 : index
    %c0_0 = arith.constant 0 : index
    %0 = vector.load %arg1[%c0, %c0_0] : memref<16x16xf32, #tpu.memory_space<vmem>>, vector<16x16xf32>
    %1 = arith.addf %0, %0 : vector<16x16xf32>
    %c0_1 = arith.constant 0 : index
    %c0_2 = arith.constant 0 : index
    %c0_3 = arith.constant 0 : index
    %2 = vector.load %arg2[%c0_1, %c0_2, %c0_3] : memref<4x16x128xf32, #tpu.memory_space<vmem>>, vector<1x16x128xf32>
    %3 = vector.shape_cast %2 : vector<1x16x128xf32> to vector<16x128xf32>
    %cst = arith.constant dense<0.000000e+00> : vector<16x128xf32>
    %4 = tpu.matmul %0, %3, %cst {dimension_numbers = #tpu.dot_dimension_numbers<[1], [0], [0], [1], [0, 0, 1, 1], [], []>} : vector<16x16xf32>, vector<16x128xf32>, vector<16x128xf32> -> vector<16x128xf32>
    %cst_4 = arith.constant dense<0.000000e+00> : vector<16x128xf32>
    %5 = tpu.matmul %1, %4, %cst_4 {dimension_numbers = #tpu.dot_dimension_numbers<[1], [0], [0], [1], [0, 0, 1, 1], [], []>} : vector<16x16xf32>, vector<16x128xf32>, vector<16x128xf32> -> vector<16x128xf32>
    %6 = arith.subf %5, %3 : vector<16x128xf32>
    %c1 = arith.constant 1 : index
    %c0_5 = arith.constant 0 : index
    %c0_6 = arith.constant 0 : index
    %7 = vector.load %arg2[%c1, %c0_5, %c0_6] : memref<4x16x128xf32, #tpu.memory_space<vmem>>, vector<1x16x128xf32>
    %8 = vector.shape_cast %7 : vector<1x16x128xf32> to vector<16x128xf32>
    %cst_7 = arith.constant dense<0.000000e+00> : vector<16x128xf32>
    %9 = tpu.matmul %0, %8, %cst_7 {dimension_numbers = #tpu.dot_dimension_numbers<[1], [0], [0], [1], [0, 0, 1, 1], [], []>} : vector<16x16xf32>, vector<16x128xf32>, vector<16x128xf32> -> vector<16x128xf32>
    %cst_8 = arith.constant dense<0.000000e+00> : vector<16x128xf32>
    %10 = tpu.matmul %1, %9, %cst_8 {dimension_numbers = #tpu.dot_dimension_numbers<[1], [0], [0], [1], [0, 0, 1, 1], [], []>} : vector<16x16xf32>, vector<16x128xf32>, vector<16x128xf32> -> vector<16x128xf32>
    %11 = arith.subf %10, %8 : vector<16x128xf32>
    %c2 = arith.constant 2 : index
    %c0_9 = arith.constant 0 : index
    %c0_10 = arith.constant 0 : index
    %12 = vector.load %arg2[%c2, %c0_9, %c0_10] : memref<4x16x128xf32, #tpu.memory_space<vmem>>, vector<1x16x128xf32>
    %13 = vector.shape_cast %12 : vector<1x16x128xf32> to vector<16x128xf32>
    %cst_11 = arith.constant dense<0.000000e+00> : vector<16x128xf32>
    %14 = tpu.matmul %0, %13, %cst_11 {dimension_numbers = #tpu.dot_dimension_numbers<[1], [0], [0], [1], [0, 0, 1, 1], [], []>} : vector<16x16xf32>, vector<16x128xf32>, vector<16x128xf32> -> vector<16x128xf32>
    %cst_12 = arith.constant dense<0.000000e+00> : vector<16x128xf32>
    %15 = tpu.matmul %1, %14, %cst_12 {dimension_numbers = #tpu.dot_dimension_numbers<[1], [0], [0], [1], [0, 0, 1, 1], [], []>} : vector<16x16xf32>, vector<16x128xf32>, vector<16x128xf32> -> vector<16x128xf32>
    %16 = arith.subf %15, %13 : vector<16x128xf32>
    %c3 = arith.constant 3 : index
    %c0_13 = arith.constant 0 : index
    %c0_14 = arith.constant 0 : index
    %17 = vector.load %arg2[%c3, %c0_13, %c0_14] : memref<4x16x128xf32, #tpu.memory_space<vmem>>, vector<1x16x128xf32>
    %18 = vector.shape_cast %17 : vector<1x16x128xf32> to vector<16x128xf32>
    %cst_15 = arith.constant dense<0.000000e+00> : vector<16x128xf32>
    %19 = tpu.matmul %0, %18, %cst_15 {dimension_numbers = #tpu.dot_dimension_numbers<[1], [0], [0], [1], [0, 0, 1, 1], [], []>} : vector<16x16xf32>, vector<16x128xf32>, vector<16x128xf32> -> vector<16x128xf32>
    %cst_16 = arith.constant dense<0.000000e+00> : vector<16x128xf32>
    %20 = tpu.matmul %1, %19, %cst_16 {dimension_numbers = #tpu.dot_dimension_numbers<[1], [0], [0], [1], [0, 0, 1, 1], [], []>} : vector<16x16xf32>, vector<16x128xf32>, vector<16x128xf32> -> vector<16x128xf32>
    %21 = arith.subf %20, %18 : vector<16x128xf32>
    %c0_17 = arith.constant 0 : index
    %22 = memref.load %arg3[%c0_17] : memref<96xf32, #tpu.memory_space<smem>>
    %23 = vector.broadcast %22 : f32 to vector<16x128xf32>
    %24 = arith.mulf %3, %23 : vector<16x128xf32>
    %c8 = arith.constant 8 : index
    %25 = memref.load %arg3[%c8] : memref<96xf32, #tpu.memory_space<smem>>
    %26 = vector.broadcast %25 : f32 to vector<16x128xf32>
    %27 = arith.mulf %8, %26 : vector<16x128xf32>
    %28 = arith.addf %24, %27 : vector<16x128xf32>
    %c16 = arith.constant 16 : index
    %29 = memref.load %arg3[%c16] : memref<96xf32, #tpu.memory_space<smem>>
    %30 = vector.broadcast %29 : f32 to vector<16x128xf32>
    %31 = arith.mulf %13, %30 : vector<16x128xf32>
    %32 = arith.addf %28, %31 : vector<16x128xf32>
    %c24 = arith.constant 24 : index
    %33 = memref.load %arg3[%c24] : memref<96xf32, #tpu.memory_space<smem>>
    %34 = vector.broadcast %33 : f32 to vector<16x128xf32>
    %35 = arith.mulf %18, %34 : vector<16x128xf32>
    %36 = arith.addf %32, %35 : vector<16x128xf32>
    %c32 = arith.constant 32 : index
    %37 = memref.load %arg3[%c32] : memref<96xf32, #tpu.memory_space<smem>>
    %38 = vector.broadcast %37 : f32 to vector<16x128xf32>
    %39 = arith.mulf %4, %38 : vector<16x128xf32>
    %40 = arith.addf %36, %39 : vector<16x128xf32>
    %c40 = arith.constant 40 : index
    %41 = memref.load %arg3[%c40] : memref<96xf32, #tpu.memory_space<smem>>
    %42 = vector.broadcast %41 : f32 to vector<16x128xf32>
    %43 = arith.mulf %9, %42 : vector<16x128xf32>
    %44 = arith.addf %40, %43 : vector<16x128xf32>
    %c48 = arith.constant 48 : index
    %45 = memref.load %arg3[%c48] : memref<96xf32, #tpu.memory_space<smem>>
    %46 = vector.broadcast %45 : f32 to vector<16x128xf32>
    %47 = arith.mulf %14, %46 : vector<16x128xf32>
    %48 = arith.addf %44, %47 : vector<16x128xf32>
    %c56 = arith.constant 56 : index
    %49 = memref.load %arg3[%c56] : memref<96xf32, #tpu.memory_space<smem>>
    %50 = vector.broadcast %49 : f32 to vector<16x128xf32>
    %51 = arith.mulf %19, %50 : vector<16x128xf32>
    %52 = arith.addf %48, %51 : vector<16x128xf32>
    %c64 = arith.constant 64 : index
    %53 = memref.load %arg3[%c64] : memref<96xf32, #tpu.memory_space<smem>>
    %54 = vector.broadcast %53 : f32 to vector<16x128xf32>
    %55 = arith.mulf %6, %54 : vector<16x128xf32>
    %56 = arith.addf %52, %55 : vector<16x128xf32>
    %c72 = arith.constant 72 : index
    %57 = memref.load %arg3[%c72] : memref<96xf32, #tpu.memory_space<smem>>
    %58 = vector.broadcast %57 : f32 to vector<16x128xf32>
    %59 = arith.mulf %11, %58 : vector<16x128xf32>
    %60 = arith.addf %56, %59 : vector<16x128xf32>
    %c80 = arith.constant 80 : index
    %61 = memref.load %arg3[%c80] : memref<96xf32, #tpu.memory_space<smem>>
    %62 = vector.broadcast %61 : f32 to vector<16x128xf32>
    %63 = arith.mulf %16, %62 : vector<16x128xf32>
    %64 = arith.addf %60, %63 : vector<16x128xf32>
    %c88 = arith.constant 88 : index
    %65 = memref.load %arg3[%c88] : memref<96xf32, #tpu.memory_space<smem>>
    %66 = vector.broadcast %65 : f32 to vector<16x128xf32>
    %67 = arith.mulf %21, %66 : vector<16x128xf32>
    %68 = arith.addf %64, %67 : vector<16x128xf32>
    %c0_18 = arith.constant 0 : index
    %69 = memref.load %arg4[%c0_18] : memref<8xf32, #tpu.memory_space<smem>>
    %70 = vector.broadcast %69 : f32 to vector<16x128xf32>
    %71 = arith.addf %68, %70 : vector<16x128xf32>
    %c0_19 = arith.constant 0 : index
    %c0_20 = arith.constant 0 : index
    %c0_21 = arith.constant 0 : index
    %72 = vector.load %arg5[%c0_19, %c0_20, %c0_21] : memref<8x16x128xf32, #tpu.memory_space<vmem>>, vector<1x16x128xf32>
    %73 = vector.shape_cast %72 : vector<1x16x128xf32> to vector<16x128xf32>
    %74 = vector.shape_cast %71 : vector<16x128xf32> to vector<1x16x128xf32>
    tpu.vector_store %arg5[%c0_19, %c0_20, %c0_21], %74 {strides = array<i32>} : memref<8x16x128xf32, #tpu.memory_space<vmem>>, vector<1x16x128xf32>,
    %c1_22 = arith.constant 1 : index
    %75 = memref.load %arg3[%c1_22] : memref<96xf32, #tpu.memory_space<smem>>
    %76 = vector.broadcast %75 : f32 to vector<16x128xf32>
    %77 = arith.mulf %3, %76 : vector<16x128xf32>
    %c9 = arith.constant 9 : index
    %78 = memref.load %arg3[%c9] : memref<96xf32, #tpu.memory_space<smem>>
    %79 = vector.broadcast %78 : f32 to vector<16x128xf32>
    %80 = arith.mulf %8, %79 : vector<16x128xf32>
    %81 = arith.addf %77, %80 : vector<16x128xf32>
    %c17 = arith.constant 17 : index
    %82 = memref.load %arg3[%c17] : memref<96xf32, #tpu.memory_space<smem>>
    %83 = vector.broadcast %82 : f32 to vector<16x128xf32>
    %84 = arith.mulf %13, %83 : vector<16x128xf32>
    %85 = arith.addf %81, %84 : vector<16x128xf32>
    %c25 = arith.constant 25 : index
    %86 = memref.load %arg3[%c25] : memref<96xf32, #tpu.memory_space<smem>>
    %87 = vector.broadcast %86 : f32 to vector<16x128xf32>
    %88 = arith.mulf %18, %87 : vector<16x128xf32>
    %89 = arith.addf %85, %88 : vector<16x128xf32>
    %c33 = arith.constant 33 : index
    %90 = memref.load %arg3[%c33] : memref<96xf32, #tpu.memory_space<smem>>
    %91 = vector.broadcast %90 : f32 to vector<16x128xf32>
    %92 = arith.mulf %4, %91 : vector<16x128xf32>
    %93 = arith.addf %89, %92 : vector<16x128xf32>
    %c41 = arith.constant 41 : index
    %94 = memref.load %arg3[%c41] : memref<96xf32, #tpu.memory_space<smem>>
    %95 = vector.broadcast %94 : f32 to vector<16x128xf32>
    %96 = arith.mulf %9, %95 : vector<16x128xf32>
    %97 = arith.addf %93, %96 : vector<16x128xf32>
    %c49 = arith.constant 49 : index
    %98 = memref.load %arg3[%c49] : memref<96xf32, #tpu.memory_space<smem>>
    %99 = vector.broadcast %98 : f32 to vector<16x128xf32>
    %100 = arith.mulf %14, %99 : vector<16x128xf32>
    %101 = arith.addf %97, %100 : vector<16x128xf32>
    %c57 = arith.constant 57 : index
    %102 = memref.load %arg3[%c57] : memref<96xf32, #tpu.memory_space<smem>>
    %103 = vector.broadcast %102 : f32 to vector<16x128xf32>
    %104 = arith.mulf %19, %103 : vector<16x128xf32>
    %105 = arith.addf %101, %104 : vector<16x128xf32>
    %c65 = arith.constant 65 : index
    %106 = memref.load %arg3[%c65] : memref<96xf32, #tpu.memory_space<smem>>
    %107 = vector.broadcast %106 : f32 to vector<16x128xf32>
    %108 = arith.mulf %6, %107 : vector<16x128xf32>
    %109 = arith.addf %105, %108 : vector<16x128xf32>
    %c73 = arith.constant 73 : index
    %110 = memref.load %arg3[%c73] : memref<96xf32, #tpu.memory_space<smem>>
    %111 = vector.broadcast %110 : f32 to vector<16x128xf32>
    %112 = arith.mulf %11, %111 : vector<16x128xf32>
    %113 = arith.addf %109, %112 : vector<16x128xf32>
    %c81 = arith.constant 81 : index
    %114 = memref.load %arg3[%c81] : memref<96xf32, #tpu.memory_space<smem>>
    %115 = vector.broadcast %114 : f32 to vector<16x128xf32>
    %116 = arith.mulf %16, %115 : vector<16x128xf32>
    %117 = arith.addf %113, %116 : vector<16x128xf32>
    %c89 = arith.constant 89 : index
    %118 = memref.load %arg3[%c89] : memref<96xf32, #tpu.memory_space<smem>>
    %119 = vector.broadcast %118 : f32 to vector<16x128xf32>
    %120 = arith.mulf %21, %119 : vector<16x128xf32>
    %121 = arith.addf %117, %120 : vector<16x128xf32>
    %c1_23 = arith.constant 1 : index
    %122 = memref.load %arg4[%c1_23] : memref<8xf32, #tpu.memory_space<smem>>
    %123 = vector.broadcast %122 : f32 to vector<16x128xf32>
    %124 = arith.addf %121, %123 : vector<16x128xf32>
    %c1_24 = arith.constant 1 : index
    %c0_25 = arith.constant 0 : index
    %c0_26 = arith.constant 0 : index
    %125 = vector.load %arg5[%c1_24, %c0_25, %c0_26] : memref<8x16x128xf32, #tpu.memory_space<vmem>>, vector<1x16x128xf32>
    %126 = vector.shape_cast %125 : vector<1x16x128xf32> to vector<16x128xf32>
    %127 = vector.shape_cast %124 : vector<16x128xf32> to vector<1x16x128xf32>
    tpu.vector_store %arg5[%c1_24, %c0_25, %c0_26], %127 {strides = array<i32>} : memref<8x16x128xf32, #tpu.memory_space<vmem>>, vector<1x16x128xf32>,
    %c2_27 = arith.constant 2 : index
    %128 = memref.load %arg3[%c2_27] : memref<96xf32, #tpu.memory_space<smem>>
    %129 = vector.broadcast %128 : f32 to vector<16x128xf32>
    %130 = arith.mulf %3, %129 : vector<16x128xf32>
    %c10 = arith.constant 10 : index
    %131 = memref.load %arg3[%c10] : memref<96xf32, #tpu.memory_space<smem>>
    %132 = vector.broadcast %131 : f32 to vector<16x128xf32>
    %133 = arith.mulf %8, %132 : vector<16x128xf32>
    %134 = arith.addf %130, %133 : vector<16x128xf32>
    %c18 = arith.constant 18 : index
    %135 = memref.load %arg3[%c18] : memref<96xf32, #tpu.memory_space<smem>>
    %136 = vector.broadcast %135 : f32 to vector<16x128xf32>
    %137 = arith.mulf %13, %136 : vector<16x128xf32>
    %138 = arith.addf %134, %137 : vector<16x128xf32>
    %c26 = arith.constant 26 : index
    %139 = memref.load %arg3[%c26] : memref<96xf32, #tpu.memory_space<smem>>
    %140 = vector.broadcast %139 : f32 to vector<16x128xf32>
    %141 = arith.mulf %18, %140 : vector<16x128xf32>
    %142 = arith.addf %138, %141 : vector<16x128xf32>
    %c34 = arith.constant 34 : index
    %143 = memref.load %arg3[%c34] : memref<96xf32, #tpu.memory_space<smem>>
    %144 = vector.broadcast %143 : f32 to vector<16x128xf32>
    %145 = arith.mulf %4, %144 : vector<16x128xf32>
    %146 = arith.addf %142, %145 : vector<16x128xf32>
    %c42 = arith.constant 42 : index
    %147 = memref.load %arg3[%c42] : memref<96xf32, #tpu.memory_space<smem>>
    %148 = vector.broadcast %147 : f32 to vector<16x128xf32>
    %149 = arith.mulf %9, %148 : vector<16x128xf32>
    %150 = arith.addf %146, %149 : vector<16x128xf32>
    %c50 = arith.constant 50 : index
    %151 = memref.load %arg3[%c50] : memref<96xf32, #tpu.memory_space<smem>>
    %152 = vector.broadcast %151 : f32 to vector<16x128xf32>
    %153 = arith.mulf %14, %152 : vector<16x128xf32>
    %154 = arith.addf %150, %153 : vector<16x128xf32>
    %c58 = arith.constant 58 : index
    %155 = memref.load %arg3[%c58] : memref<96xf32, #tpu.memory_space<smem>>
    %156 = vector.broadcast %155 : f32 to vector<16x128xf32>
    %157 = arith.mulf %19, %156 : vector<16x128xf32>
    %158 = arith.addf %154, %157 : vector<16x128xf32>
    %c66 = arith.constant 66 : index
    %159 = memref.load %arg3[%c66] : memref<96xf32, #tpu.memory_space<smem>>
    %160 = vector.broadcast %159 : f32 to vector<16x128xf32>
    %161 = arith.mulf %6, %160 : vector<16x128xf32>
    %162 = arith.addf %158, %161 : vector<16x128xf32>
    %c74 = arith.constant 74 : index
    %163 = memref.load %arg3[%c74] : memref<96xf32, #tpu.memory_space<smem>>
    %164 = vector.broadcast %163 : f32 to vector<16x128xf32>
    %165 = arith.mulf %11, %164 : vector<16x128xf32>
    %166 = arith.addf %162, %165 : vector<16x128xf32>
    %c82 = arith.constant 82 : index
    %167 = memref.load %arg3[%c82] : memref<96xf32, #tpu.memory_space<smem>>
    %168 = vector.broadcast %167 : f32 to vector<16x128xf32>
    %169 = arith.mulf %16, %168 : vector<16x128xf32>
    %170 = arith.addf %166, %169 : vector<16x128xf32>
    %c90 = arith.constant 90 : index
    %171 = memref.load %arg3[%c90] : memref<96xf32, #tpu.memory_space<smem>>
    %172 = vector.broadcast %171 : f32 to vector<16x128xf32>
    %173 = arith.mulf %21, %172 : vector<16x128xf32>
    %174 = arith.addf %170, %173 : vector<16x128xf32>
    %c2_28 = arith.constant 2 : index
    %175 = memref.load %arg4[%c2_28] : memref<8xf32, #tpu.memory_space<smem>>
    %176 = vector.broadcast %175 : f32 to vector<16x128xf32>
    %177 = arith.addf %174, %176 : vector<16x128xf32>
    %c2_29 = arith.constant 2 : index
    %c0_30 = arith.constant 0 : index
    %c0_31 = arith.constant 0 : index
    %178 = vector.load %arg5[%c2_29, %c0_30, %c0_31] : memref<8x16x128xf32, #tpu.memory_space<vmem>>, vector<1x16x128xf32>
    %179 = vector.shape_cast %178 : vector<1x16x128xf32> to vector<16x128xf32>
    %180 = vector.shape_cast %177 : vector<16x128xf32> to vector<1x16x128xf32>
    tpu.vector_store %arg5[%c2_29, %c0_30, %c0_31], %180 {strides = array<i32>} : memref<8x16x128xf32, #tpu.memory_space<vmem>>, vector<1x16x128xf32>,
    %c3_32 = arith.constant 3 : index
    %181 = memref.load %arg3[%c3_32] : memref<96xf32, #tpu.memory_space<smem>>
    %182 = vector.broadcast %181 : f32 to vector<16x128xf32>
    %183 = arith.mulf %3, %182 : vector<16x128xf32>
    %c11 = arith.constant 11 : index
    %184 = memref.load %arg3[%c11] : memref<96xf32, #tpu.memory_space<smem>>
    %185 = vector.broadcast %184 : f32 to vector<16x128xf32>
    %186 = arith.mulf %8, %185 : vector<16x128xf32>
    %187 = arith.addf %183, %186 : vector<16x128xf32>
    %c19 = arith.constant 19 : index
    %188 = memref.load %arg3[%c19] : memref<96xf32, #tpu.memory_space<smem>>
    %189 = vector.broadcast %188 : f32 to vector<16x128xf32>
    %190 = arith.mulf %13, %189 : vector<16x128xf32>
    %191 = arith.addf %187, %190 : vector<16x128xf32>
    %c27 = arith.constant 27 : index
    %192 = memref.load %arg3[%c27] : memref<96xf32, #tpu.memory_space<smem>>
    %193 = vector.broadcast %192 : f32 to vector<16x128xf32>
    %194 = arith.mulf %18, %193 : vector<16x128xf32>
    %195 = arith.addf %191, %194 : vector<16x128xf32>
    %c35 = arith.constant 35 : index
    %196 = memref.load %arg3[%c35] : memref<96xf32, #tpu.memory_space<smem>>
    %197 = vector.broadcast %196 : f32 to vector<16x128xf32>
    %198 = arith.mulf %4, %197 : vector<16x128xf32>
    %199 = arith.addf %195, %198 : vector<16x128xf32>
    %c43 = arith.constant 43 : index
    %200 = memref.load %arg3[%c43] : memref<96xf32, #tpu.memory_space<smem>>
    %201 = vector.broadcast %200 : f32 to vector<16x128xf32>
    %202 = arith.mulf %9, %201 : vector<16x128xf32>
    %203 = arith.addf %199, %202 : vector<16x128xf32>
    %c51 = arith.constant 51 : index
    %204 = memref.load %arg3[%c51] : memref<96xf32, #tpu.memory_space<smem>>
    %205 = vector.broadcast %204 : f32 to vector<16x128xf32>
    %206 = arith.mulf %14, %205 : vector<16x128xf32>
    %207 = arith.addf %203, %206 : vector<16x128xf32>
    %c59 = arith.constant 59 : index
    %208 = memref.load %arg3[%c59] : memref<96xf32, #tpu.memory_space<smem>>
    %209 = vector.broadcast %208 : f32 to vector<16x128xf32>
    %210 = arith.mulf %19, %209 : vector<16x128xf32>
    %211 = arith.addf %207, %210 : vector<16x128xf32>
    %c67 = arith.constant 67 : index
    %212 = memref.load %arg3[%c67] : memref<96xf32, #tpu.memory_space<smem>>
    %213 = vector.broadcast %212 : f32 to vector<16x128xf32>
    %214 = arith.mulf %6, %213 : vector<16x128xf32>
    %215 = arith.addf %211, %214 : vector<16x128xf32>
    %c75 = arith.constant 75 : index
    %216 = memref.load %arg3[%c75] : memref<96xf32, #tpu.memory_space<smem>>
    %217 = vector.broadcast %216 : f32 to vector<16x128xf32>
    %218 = arith.mulf %11, %217 : vector<16x128xf32>
    %219 = arith.addf %215, %218 : vector<16x128xf32>
    %c83 = arith.constant 83 : index
    %220 = memref.load %arg3[%c83] : memref<96xf32, #tpu.memory_space<smem>>
    %221 = vector.broadcast %220 : f32 to vector<16x128xf32>
    %222 = arith.mulf %16, %221 : vector<16x128xf32>
    %223 = arith.addf %219, %222 : vector<16x128xf32>
    %c91 = arith.constant 91 : index
    %224 = memref.load %arg3[%c91] : memref<96xf32, #tpu.memory_space<smem>>
    %225 = vector.broadcast %224 : f32 to vector<16x128xf32>
    %226 = arith.mulf %21, %225 : vector<16x128xf32>
    %227 = arith.addf %223, %226 : vector<16x128xf32>
    %c3_33 = arith.constant 3 : index
    %228 = memref.load %arg4[%c3_33] : memref<8xf32, #tpu.memory_space<smem>>
    %229 = vector.broadcast %228 : f32 to vector<16x128xf32>
    %230 = arith.addf %227, %229 : vector<16x128xf32>
    %c3_34 = arith.constant 3 : index
    %c0_35 = arith.constant 0 : index
    %c0_36 = arith.constant 0 : index
    %231 = vector.load %arg5[%c3_34, %c0_35, %c0_36] : memref<8x16x128xf32, #tpu.memory_space<vmem>>, vector<1x16x128xf32>
    %232 = vector.shape_cast %231 : vector<1x16x128xf32> to vector<16x128xf32>
    %233 = vector.shape_cast %230 : vector<16x128xf32> to vector<1x16x128xf32>
    tpu.vector_store %arg5[%c3_34, %c0_35, %c0_36], %233 {strides = array<i32>} : memref<8x16x128xf32, #tpu.memory_space<vmem>>, vector<1x16x128xf32>,
    %c4 = arith.constant 4 : index
    %234 = memref.load %arg3[%c4] : memref<96xf32, #tpu.memory_space<smem>>
    %235 = vector.broadcast %234 : f32 to vector<16x128xf32>
    %236 = arith.mulf %3, %235 : vector<16x128xf32>
    %c12 = arith.constant 12 : index
    %237 = memref.load %arg3[%c12] : memref<96xf32, #tpu.memory_space<smem>>
    %238 = vector.broadcast %237 : f32 to vector<16x128xf32>
    %239 = arith.mulf %8, %238 : vector<16x128xf32>
    %240 = arith.addf %236, %239 : vector<16x128xf32>
    %c20 = arith.constant 20 : index
    %241 = memref.load %arg3[%c20] : memref<96xf32, #tpu.memory_space<smem>>
    %242 = vector.broadcast %241 : f32 to vector<16x128xf32>
    %243 = arith.mulf %13, %242 : vector<16x128xf32>
    %244 = arith.addf %240, %243 : vector<16x128xf32>
    %c28 = arith.constant 28 : index
    %245 = memref.load %arg3[%c28] : memref<96xf32, #tpu.memory_space<smem>>
    %246 = vector.broadcast %245 : f32 to vector<16x128xf32>
    %247 = arith.mulf %18, %246 : vector<16x128xf32>
    %248 = arith.addf %244, %247 : vector<16x128xf32>
    %c36 = arith.constant 36 : index
    %249 = memref.load %arg3[%c36] : memref<96xf32, #tpu.memory_space<smem>>
    %250 = vector.broadcast %249 : f32 to vector<16x128xf32>
    %251 = arith.mulf %4, %250 : vector<16x128xf32>
    %252 = arith.addf %248, %251 : vector<16x128xf32>
    %c44 = arith.constant 44 : index
    %253 = memref.load %arg3[%c44] : memref<96xf32, #tpu.memory_space<smem>>
    %254 = vector.broadcast %253 : f32 to vector<16x128xf32>
    %255 = arith.mulf %9, %254 : vector<16x128xf32>
    %256 = arith.addf %252, %255 : vector<16x128xf32>
    %c52 = arith.constant 52 : index
    %257 = memref.load %arg3[%c52] : memref<96xf32, #tpu.memory_space<smem>>
    %258 = vector.broadcast %257 : f32 to vector<16x128xf32>
    %259 = arith.mulf %14, %258 : vector<16x128xf32>
    %260 = arith.addf %256, %259 : vector<16x128xf32>
    %c60 = arith.constant 60 : index
    %261 = memref.load %arg3[%c60] : memref<96xf32, #tpu.memory_space<smem>>
    %262 = vector.broadcast %261 : f32 to vector<16x128xf32>
    %263 = arith.mulf %19, %262 : vector<16x128xf32>
    %264 = arith.addf %260, %263 : vector<16x128xf32>
    %c68 = arith.constant 68 : index
    %265 = memref.load %arg3[%c68] : memref<96xf32, #tpu.memory_space<smem>>
    %266 = vector.broadcast %265 : f32 to vector<16x128xf32>
    %267 = arith.mulf %6, %266 : vector<16x128xf32>
    %268 = arith.addf %264, %267 : vector<16x128xf32>
    %c76 = arith.constant 76 : index
    %269 = memref.load %arg3[%c76] : memref<96xf32, #tpu.memory_space<smem>>
    %270 = vector.broadcast %269 : f32 to vector<16x128xf32>
    %271 = arith.mulf %11, %270 : vector<16x128xf32>
    %272 = arith.addf %268, %271 : vector<16x128xf32>
    %c84 = arith.constant 84 : index
    %273 = memref.load %arg3[%c84] : memref<96xf32, #tpu.memory_space<smem>>
    %274 = vector.broadcast %273 : f32 to vector<16x128xf32>
    %275 = arith.mulf %16, %274 : vector<16x128xf32>
    %276 = arith.addf %272, %275 : vector<16x128xf32>
    %c92 = arith.constant 92 : index
    %277 = memref.load %arg3[%c92] : memref<96xf32, #tpu.memory_space<smem>>
    %278 = vector.broadcast %277 : f32 to vector<16x128xf32>
    %279 = arith.mulf %21, %278 : vector<16x128xf32>
    %280 = arith.addf %276, %279 : vector<16x128xf32>
    %c4_37 = arith.constant 4 : index
    %281 = memref.load %arg4[%c4_37] : memref<8xf32, #tpu.memory_space<smem>>
    %282 = vector.broadcast %281 : f32 to vector<16x128xf32>
    %283 = arith.addf %280, %282 : vector<16x128xf32>
    %c4_38 = arith.constant 4 : index
    %c0_39 = arith.constant 0 : index
    %c0_40 = arith.constant 0 : index
    %284 = vector.load %arg5[%c4_38, %c0_39, %c0_40] : memref<8x16x128xf32, #tpu.memory_space<vmem>>, vector<1x16x128xf32>
    %285 = vector.shape_cast %284 : vector<1x16x128xf32> to vector<16x128xf32>
    %286 = vector.shape_cast %283 : vector<16x128xf32> to vector<1x16x128xf32>
    tpu.vector_store %arg5[%c4_38, %c0_39, %c0_40], %286 {strides = array<i32>} : memref<8x16x128xf32, #tpu.memory_space<vmem>>, vector<1x16x128xf32>,
    %c5 = arith.constant 5 : index
    %287 = memref.load %arg3[%c5] : memref<96xf32, #tpu.memory_space<smem>>
    %288 = vector.broadcast %287 : f32 to vector<16x128xf32>
    %289 = arith.mulf %3, %288 : vector<16x128xf32>
    %c13 = arith.constant 13 : index
    %290 = memref.load %arg3[%c13] : memref<96xf32, #tpu.memory_space<smem>>
    %291 = vector.broadcast %290 : f32 to vector<16x128xf32>
    %292 = arith.mulf %8, %291 : vector<16x128xf32>
    %293 = arith.addf %289, %292 : vector<16x128xf32>
    %c21 = arith.constant 21 : index
    %294 = memref.load %arg3[%c21] : memref<96xf32, #tpu.memory_space<smem>>
    %295 = vector.broadcast %294 : f32 to vector<16x128xf32>
    %296 = arith.mulf %13, %295 : vector<16x128xf32>
    %297 = arith.addf %293, %296 : vector<16x128xf32>
    %c29 = arith.constant 29 : index
    %298 = memref.load %arg3[%c29] : memref<96xf32, #tpu.memory_space<smem>>
    %299 = vector.broadcast %298 : f32 to vector<16x128xf32>
    %300 = arith.mulf %18, %299 : vector<16x128xf32>
    %301 = arith.addf %297, %300 : vector<16x128xf32>
    %c37 = arith.constant 37 : index
    %302 = memref.load %arg3[%c37] : memref<96xf32, #tpu.memory_space<smem>>
    %303 = vector.broadcast %302 : f32 to vector<16x128xf32>
    %304 = arith.mulf %4, %303 : vector<16x128xf32>
    %305 = arith.addf %301, %304 : vector<16x128xf32>
    %c45 = arith.constant 45 : index
    %306 = memref.load %arg3[%c45] : memref<96xf32, #tpu.memory_space<smem>>
    %307 = vector.broadcast %306 : f32 to vector<16x128xf32>
    %308 = arith.mulf %9, %307 : vector<16x128xf32>
    %309 = arith.addf %305, %308 : vector<16x128xf32>
    %c53 = arith.constant 53 : index
    %310 = memref.load %arg3[%c53] : memref<96xf32, #tpu.memory_space<smem>>
    %311 = vector.broadcast %310 : f32 to vector<16x128xf32>
    %312 = arith.mulf %14, %311 : vector<16x128xf32>
    %313 = arith.addf %309, %312 : vector<16x128xf32>
    %c61 = arith.constant 61 : index
    %314 = memref.load %arg3[%c61] : memref<96xf32, #tpu.memory_space<smem>>
    %315 = vector.broadcast %314 : f32 to vector<16x128xf32>
    %316 = arith.mulf %19, %315 : vector<16x128xf32>
    %317 = arith.addf %313, %316 : vector<16x128xf32>
    %c69 = arith.constant 69 : index
    %318 = memref.load %arg3[%c69] : memref<96xf32, #tpu.memory_space<smem>>
    %319 = vector.broadcast %318 : f32 to vector<16x128xf32>
    %320 = arith.mulf %6, %319 : vector<16x128xf32>
    %321 = arith.addf %317, %320 : vector<16x128xf32>
    %c77 = arith.constant 77 : index
    %322 = memref.load %arg3[%c77] : memref<96xf32, #tpu.memory_space<smem>>
    %323 = vector.broadcast %322 : f32 to vector<16x128xf32>
    %324 = arith.mulf %11, %323 : vector<16x128xf32>
    %325 = arith.addf %321, %324 : vector<16x128xf32>
    %c85 = arith.constant 85 : index
    %326 = memref.load %arg3[%c85] : memref<96xf32, #tpu.memory_space<smem>>
    %327 = vector.broadcast %326 : f32 to vector<16x128xf32>
    %328 = arith.mulf %16, %327 : vector<16x128xf32>
    %329 = arith.addf %325, %328 : vector<16x128xf32>
    %c93 = arith.constant 93 : index
    %330 = memref.load %arg3[%c93] : memref<96xf32, #tpu.memory_space<smem>>
    %331 = vector.broadcast %330 : f32 to vector<16x128xf32>
    %332 = arith.mulf %21, %331 : vector<16x128xf32>
    %333 = arith.addf %329, %332 : vector<16x128xf32>
    %c5_41 = arith.constant 5 : index
    %334 = memref.load %arg4[%c5_41] : memref<8xf32, #tpu.memory_space<smem>>
    %335 = vector.broadcast %334 : f32 to vector<16x128xf32>
    %336 = arith.addf %333, %335 : vector<16x128xf32>
    %c5_42 = arith.constant 5 : index
    %c0_43 = arith.constant 0 : index
    %c0_44 = arith.constant 0 : index
    %337 = vector.load %arg5[%c5_42, %c0_43, %c0_44] : memref<8x16x128xf32, #tpu.memory_space<vmem>>, vector<1x16x128xf32>
    %338 = vector.shape_cast %337 : vector<1x16x128xf32> to vector<16x128xf32>
    %339 = vector.shape_cast %336 : vector<16x128xf32> to vector<1x16x128xf32>
    tpu.vector_store %arg5[%c5_42, %c0_43, %c0_44], %339 {strides = array<i32>} : memref<8x16x128xf32, #tpu.memory_space<vmem>>, vector<1x16x128xf32>,
    %c6 = arith.constant 6 : index
    %340 = memref.load %arg3[%c6] : memref<96xf32, #tpu.memory_space<smem>>
    %341 = vector.broadcast %340 : f32 to vector<16x128xf32>
    %342 = arith.mulf %3, %341 : vector<16x128xf32>
    %c14 = arith.constant 14 : index
    %343 = memref.load %arg3[%c14] : memref<96xf32, #tpu.memory_space<smem>>
    %344 = vector.broadcast %343 : f32 to vector<16x128xf32>
    %345 = arith.mulf %8, %344 : vector<16x128xf32>
    %346 = arith.addf %342, %345 : vector<16x128xf32>
    %c22 = arith.constant 22 : index
    %347 = memref.load %arg3[%c22] : memref<96xf32, #tpu.memory_space<smem>>
    %348 = vector.broadcast %347 : f32 to vector<16x128xf32>
    %349 = arith.mulf %13, %348 : vector<16x128xf32>
    %350 = arith.addf %346, %349 : vector<16x128xf32>
    %c30 = arith.constant 30 : index
    %351 = memref.load %arg3[%c30] : memref<96xf32, #tpu.memory_space<smem>>
    %352 = vector.broadcast %351 : f32 to vector<16x128xf32>
    %353 = arith.mulf %18, %352 : vector<16x128xf32>
    %354 = arith.addf %350, %353 : vector<16x128xf32>
    %c38 = arith.constant 38 : index
    %355 = memref.load %arg3[%c38] : memref<96xf32, #tpu.memory_space<smem>>
    %356 = vector.broadcast %355 : f32 to vector<16x128xf32>
    %357 = arith.mulf %4, %356 : vector<16x128xf32>
    %358 = arith.addf %354, %357 : vector<16x128xf32>
    %c46 = arith.constant 46 : index
    %359 = memref.load %arg3[%c46] : memref<96xf32, #tpu.memory_space<smem>>
    %360 = vector.broadcast %359 : f32 to vector<16x128xf32>
    %361 = arith.mulf %9, %360 : vector<16x128xf32>
    %362 = arith.addf %358, %361 : vector<16x128xf32>
    %c54 = arith.constant 54 : index
    %363 = memref.load %arg3[%c54] : memref<96xf32, #tpu.memory_space<smem>>
    %364 = vector.broadcast %363 : f32 to vector<16x128xf32>
    %365 = arith.mulf %14, %364 : vector<16x128xf32>
    %366 = arith.addf %362, %365 : vector<16x128xf32>
    %c62 = arith.constant 62 : index
    %367 = memref.load %arg3[%c62] : memref<96xf32, #tpu.memory_space<smem>>
    %368 = vector.broadcast %367 : f32 to vector<16x128xf32>
    %369 = arith.mulf %19, %368 : vector<16x128xf32>
    %370 = arith.addf %366, %369 : vector<16x128xf32>
    %c70 = arith.constant 70 : index
    %371 = memref.load %arg3[%c70] : memref<96xf32, #tpu.memory_space<smem>>
    %372 = vector.broadcast %371 : f32 to vector<16x128xf32>
    %373 = arith.mulf %6, %372 : vector<16x128xf32>
    %374 = arith.addf %370, %373 : vector<16x128xf32>
    %c78 = arith.constant 78 : index
    %375 = memref.load %arg3[%c78] : memref<96xf32, #tpu.memory_space<smem>>
    %376 = vector.broadcast %375 : f32 to vector<16x128xf32>
    %377 = arith.mulf %11, %376 : vector<16x128xf32>
    %378 = arith.addf %374, %377 : vector<16x128xf32>
    %c86 = arith.constant 86 : index
    %379 = memref.load %arg3[%c86] : memref<96xf32, #tpu.memory_space<smem>>
    %380 = vector.broadcast %379 : f32 to vector<16x128xf32>
    %381 = arith.mulf %16, %380 : vector<16x128xf32>
    %382 = arith.addf %378, %381 : vector<16x128xf32>
    %c94 = arith.constant 94 : index
    %383 = memref.load %arg3[%c94] : memref<96xf32, #tpu.memory_space<smem>>
    %384 = vector.broadcast %383 : f32 to vector<16x128xf32>
    %385 = arith.mulf %21, %384 : vector<16x128xf32>
    %386 = arith.addf %382, %385 : vector<16x128xf32>
    %c6_45 = arith.constant 6 : index
    %387 = memref.load %arg4[%c6_45] : memref<8xf32, #tpu.memory_space<smem>>
    %388 = vector.broadcast %387 : f32 to vector<16x128xf32>
    %389 = arith.addf %386, %388 : vector<16x128xf32>
    %c6_46 = arith.constant 6 : index
    %c0_47 = arith.constant 0 : index
    %c0_48 = arith.constant 0 : index
    %390 = vector.load %arg5[%c6_46, %c0_47, %c0_48] : memref<8x16x128xf32, #tpu.memory_space<vmem>>, vector<1x16x128xf32>
    %391 = vector.shape_cast %390 : vector<1x16x128xf32> to vector<16x128xf32>
    %392 = vector.shape_cast %389 : vector<16x128xf32> to vector<1x16x128xf32>
    tpu.vector_store %arg5[%c6_46, %c0_47, %c0_48], %392 {strides = array<i32>} : memref<8x16x128xf32, #tpu.memory_space<vmem>>, vector<1x16x128xf32>,
    %c7 = arith.constant 7 : index
    %393 = memref.load %arg3[%c7] : memref<96xf32, #tpu.memory_space<smem>>
    %394 = vector.broadcast %393 : f32 to vector<16x128xf32>
    %395 = arith.mulf %3, %394 : vector<16x128xf32>
    %c15 = arith.constant 15 : index
    %396 = memref.load %arg3[%c15] : memref<96xf32, #tpu.memory_space<smem>>
    %397 = vector.broadcast %396 : f32 to vector<16x128xf32>
    %398 = arith.mulf %8, %397 : vector<16x128xf32>
    %399 = arith.addf %395, %398 : vector<16x128xf32>
    %c23 = arith.constant 23 : index
    %400 = memref.load %arg3[%c23] : memref<96xf32, #tpu.memory_space<smem>>
    %401 = vector.broadcast %400 : f32 to vector<16x128xf32>
    %402 = arith.mulf %13, %401 : vector<16x128xf32>
    %403 = arith.addf %399, %402 : vector<16x128xf32>
    %c31 = arith.constant 31 : index
    %404 = memref.load %arg3[%c31] : memref<96xf32, #tpu.memory_space<smem>>
    %405 = vector.broadcast %404 : f32 to vector<16x128xf32>
    %406 = arith.mulf %18, %405 : vector<16x128xf32>
    %407 = arith.addf %403, %406 : vector<16x128xf32>
    %c39 = arith.constant 39 : index
    %408 = memref.load %arg3[%c39] : memref<96xf32, #tpu.memory_space<smem>>
    %409 = vector.broadcast %408 : f32 to vector<16x128xf32>
    %410 = arith.mulf %4, %409 : vector<16x128xf32>
    %411 = arith.addf %407, %410 : vector<16x128xf32>
    %c47 = arith.constant 47 : index
    %412 = memref.load %arg3[%c47] : memref<96xf32, #tpu.memory_space<smem>>
    %413 = vector.broadcast %412 : f32 to vector<16x128xf32>
    %414 = arith.mulf %9, %413 : vector<16x128xf32>
    %415 = arith.addf %411, %414 : vector<16x128xf32>
    %c55 = arith.constant 55 : index
    %416 = memref.load %arg3[%c55] : memref<96xf32, #tpu.memory_space<smem>>
    %417 = vector.broadcast %416 : f32 to vector<16x128xf32>
    %418 = arith.mulf %14, %417 : vector<16x128xf32>
    %419 = arith.addf %415, %418 : vector<16x128xf32>
    %c63 = arith.constant 63 : index
    %420 = memref.load %arg3[%c63] : memref<96xf32, #tpu.memory_space<smem>>
    %421 = vector.broadcast %420 : f32 to vector<16x128xf32>
    %422 = arith.mulf %19, %421 : vector<16x128xf32>
    %423 = arith.addf %419, %422 : vector<16x128xf32>
    %c71 = arith.constant 71 : index
    %424 = memref.load %arg3[%c71] : memref<96xf32, #tpu.memory_space<smem>>
    %425 = vector.broadcast %424 : f32 to vector<16x128xf32>
    %426 = arith.mulf %6, %425 : vector<16x128xf32>
    %427 = arith.addf %423, %426 : vector<16x128xf32>
    %c79 = arith.constant 79 : index
    %428 = memref.load %arg3[%c79] : memref<96xf32, #tpu.memory_space<smem>>
    %429 = vector.broadcast %428 : f32 to vector<16x128xf32>
    %430 = arith.mulf %11, %429 : vector<16x128xf32>
    %431 = arith.addf %427, %430 : vector<16x128xf32>
    %c87 = arith.constant 87 : index
    %432 = memref.load %arg3[%c87] : memref<96xf32, #tpu.memory_space<smem>>
    %433 = vector.broadcast %432 : f32 to vector<16x128xf32>
    %434 = arith.mulf %16, %433 : vector<16x128xf32>
    %435 = arith.addf %431, %434 : vector<16x128xf32>
    %c95 = arith.constant 95 : index
    %436 = memref.load %arg3[%c95] : memref<96xf32, #tpu.memory_space<smem>>
    %437 = vector.broadcast %436 : f32 to vector<16x128xf32>
    %438 = arith.mulf %21, %437 : vector<16x128xf32>
    %439 = arith.addf %435, %438 : vector<16x128xf32>
    %c7_49 = arith.constant 7 : index
    %440 = memref.load %arg4[%c7_49] : memref<8xf32, #tpu.memory_space<smem>>
    %441 = vector.broadcast %440 : f32 to vector<16x128xf32>
    %442 = arith.addf %439, %441 : vector<16x128xf32>
    %c7_50 = arith.constant 7 : index
    %c0_51 = arith.constant 0 : index
    %c0_52 = arith.constant 0 : index
    %443 = vector.load %arg5[%c7_50, %c0_51, %c0_52] : memref<8x16x128xf32, #tpu.memory_space<vmem>>, vector<1x16x128xf32>
    %444 = vector.shape_cast %443 : vector<1x16x128xf32> to vector<16x128xf32>
    %445 = vector.shape_cast %442 : vector<16x128xf32> to vector<1x16x128xf32>
    tpu.vector_store %arg5[%c7_50, %c0_51, %c0_52], %445 {strides = array<i32>} : memref<8x16x128xf32, #tpu.memory_space<vmem>>, vector<1x16x128xf32>,
    return
  }
  func.func @transform_0(%arg0: i32) -> (i32, i32) {
    %c0_i32 = arith.constant 0 : i32
    %c0_i32_0 = arith.constant 0 : i32
    %c0_i32_1 = arith.constant 0 : i32
    return %c0_i32, %c0_i32_0 : i32, i32
  }
  func.func @transform_1(%arg0: i32) -> (i32, i32, i32) {
    %c0_i32 = arith.constant 0 : i32
    %c0_i32_0 = arith.constant 0 : i32
    %c0_i32_1 = arith.constant 0 : i32
    return %c0_i32, %c0_i32_0, %arg0 : i32, i32, i32
  }
  func.func @transform_2(%arg0: i32) -> i32 {
    %c0_i32 = arith.constant 0 : i32
    %c0_i32_0 = arith.constant 0 : i32
    return %c0_i32 : i32
  }
  func.func @transform_3(%arg0: i32) -> i32 {
    %c0_i32 = arith.constant 0 : i32
    %c0_i32_0 = arith.constant 0 : i32
    return %c0_i32 : i32
  }
  func.func @transform_4(%arg0: i32) -> (i32, i32, i32) {
    %c0_i32 = arith.constant 0 : i32
    %c0_i32_0 = arith.constant 0 : i32
    %c0_i32_1 = arith.constant 0 : i32
    return %c0_i32, %c0_i32_0, %arg0 : i32, i32, i32
  }
}

</mosaic_0001>

<bundles_post_ra>
// kernel: tpu_custom_call.1
= control target key start
LH: loop header
LB: loop body
LE: loop exit
PB: predicated region body
PF: predicated region fallthrough
CT: control target
= control target key end

     0   :  { %s3449_s0 = inlined_call_operand.hbm [shape: f32[16,16], index: 0, kind: input, shape index: {}]   ;;  %s3450_s1 = inlined_call_operand.hbm [shape: f32[4,16,256], index: 1, kind: input, shape index: {}]   ;;  %s3451_s2 = inlined_call_operand.vmem [shape: f32[96], index: 2, kind: input, shape index: {}]   ;;  %s3452_s3 = inlined_call_operand.vmem [shape: f32[8], index: 3, kind: input, shape index: {}]   ;;  %s3453_s4 = inlined_call_operand.hbm [shape: f32[8,16,256], index: 4, kind: output, shape index: {}]  }
   0x1   :  { %3483 = sst [smem:[#allocation36_spill]] %s3449_s0 }
   0x2   :  { %3484 = sst [smem:[#allocation37_spill]] %s3450_s1 }
   0x3   :  { %3485 = sst [smem:[#allocation38_spill]] %s3451_s2 }
   0x4   :  { %3486 = sst [smem:[#allocation39_spill]] %s3452_s3 }
   0x5   :  { %3487 = sst [smem:[#allocation40_spill]] %s3453_s4 }
   0x6   :  { %9 = vsyncpa [#allocation3], 0 }
   0x7   :  { %10 = vsyncpa [#allocation7], 0 }
   0x8   :  { %12 = vsyncpa [#allocation7 + $0x1], 0 }
   0x9   :  { %13 = vsyncpa [#allocation5], 0 }
   0xa   :  { %14 = vsyncpa [#allocation10], 0 }
   0xb   :  { %15 = vsyncpa [#allocation4], 0 }
   0xc   :  { %17 = vsyncpa [#allocation4 + $0x1], 0  ;;  %s2197_s15 = smov 0   ;;  %s2199_s16 = smov 0  }
   0xd   :  { %s2201_s17 = smov 0   ;;  %s2203_s18 = smov 0  }
   0xe LB: > { %3488 = sst [smem:[#allocation17_spill]] %s2147_s15  ;;  %s2218_s19 = sadd.s32 4294967295, %s2159_s18   ;;  %s2159_s18 = sphi %s2203_s18, %s3571_s18   ;;  %s2155_s17 = sphi %s2201_s17, %s3574_s17   ;;  %s2151_s16 = sphi %s2199_s16, %s3573_s16   ;;  %s2147_s15 = sphi %s2197_s15, %s3572_s15  }
   0xf   : > { %3489 = sst [smem:[#allocation18_spill]] %s2151_s16  ;;  %s1628_s20 = sadd.s32 4294967294, %s2159_s18  }
  0x10   : > { %3490 = sst [smem:[#allocation19_spill]] %s2155_s17  ;;  %s2222_s21 = sadd.s32 1, %s2159_s18  }
  0x11   : > { %3491 = sst [smem:[#allocation20_spill]] %s2159_s18  ;;  %s51_s22 = sadd.s32 1, %s2155_s17 }
  0x12   : > { %3492 = sst [smem:[#allocation21_spill]] %s2218_s19  ;;  %s48_s23 = ssub.s32 %s2159_s18, %s2222_s21 }
  0x13   : > { %3493 = sst [smem:[#allocation22_spill]] %s2222_s21  ;;  %p58_p0 = scmp.ne.s32.totalorder %s2155_s17, %s2151_s16 }
  0x14   : > { %p49_p1 = scmp.eq.s32.totalorder %s48_s23, 0  ;;  %p59_p2 = scmp.eq.s32.totalorder %s2159_s18, 0 }
  0x15   : > { %p64_p3 = scmp.ne.s32.totalorder %s2151_s16, %s2147_s15  ;;  %p3454_p4 = scmp.eq.s32.totalorder %s2218_s19, 0 }
  0x16   : > { %s2234_s24 = scalar_select %p49_p1, %s2155_s17, %s51_s22  }
  0x17   : > { %p2236_p5 = por %p59_p2, %p58_p0  ;;  %p2242_p6 = por %p3454_p4, %p64_p3 }
  0x18   : > { %3494 = sst [smem:[#allocation23_spill]] %s2234_s24  ;;  %p130_p7 = scmp.eq.s32.totalorder %s2218_s19, 1 }
  0x19   : > { %s3495_s25 = scalar_select %p2236_p5, 1, 0 }
  0x1a   : > { %s3496_s26 = scalar_select %p2242_p6, 1, 0 }
  0x1b   : > { %p136_p8 = scmp.eq.s32.totalorder %s1628_s20, 1  ;;  %p1629_p9 = scmp.ge.s32.totalorder %s2159_s18, 1 }
  0x1c   : > { %p143_p10 = scmp.lt.s32.totalorder %s2159_s18, 3  ;;  %p2249_p11 = por %p130_p7, %p58_p0 }
  0x1d   : > { %p2253_p12 = por %p136_p8, %p64_p3  ;;  %s2161_s30 = smov [#allocation2]  }
  0x1e   : > { %s3497_s27 = scalar_select %p2249_p11, 1, 0 }
  0x1f   : > { %s3499_s28 = scalar_select %p2253_p12, 1, 0 }
  0x20   : > { %3498 = sst [smem:[#allocation24_spill]] %s3497_s27  ;;  %p2257_p13 = pnand %p1629_p9, %p143_p10 }
  0x21   : > { %3500 = sst [smem:[#allocation25_spill]] %s3499_s28  ;;  %s155_s5 = sshll.u32 %s2161_s30, 4  ;;  %s156_s5 = int_to_ptr.vmem [resolvable:$true] %s155_s5 }
  0x22   : > { %s3501_s29 = scalar_select %p2257_p13, 1, 0 }
  0x23   : > { %p1920_p1 = pneg %p2257_p13  ;;  %s3503_s2 = sld [smem:[#allocation38_spill]] }
  0x24   : > { %s3504_s0 = sld [smem:[#allocation36_spill]] }
  0x25   : > { %p2265_p2 = pnand %p1920_p1, %p3454_p4 }
  0x27   : > { %p1995_p8 = pneg %p2265_p2 }
  0x29   : > { %s169_s9 = sshll.u32 %s3503_s2, 4  ;;  %s2274_s9 = int_to_ptr.vmem [resolvable:$true] %s169_s9 }
  0x2a   : > { %s1993_s12 = scalar_lea.hbm %s3504_s0, 256 }
  0x2b   : > { %p1994_p7 = scmp.ne.s32.totalorder %s3504_s0, %s1993_s12  ;;  %p2000_p1 = scmp.lt.u32.totalorder %s1993_s12, %s3504_s0 }
  0x2d   : > { %p1996_p9 = pnand %p1995_p8, %p1994_p7 }
  0x2f   : > { %p1997_p10 = pneg %p1996_p9 }
  0x31   : > { %p2002_p0 = pnand %p2000_p1, %p1997_p10 }
  0x33   : > { %2005 = shalt.err (!%p2002_p0)
}
  0x34   : > { %s2006_s23 = scalar_lea.vmem %s156_s5, 256  ;;  %p2014_p11 = scmp.lt.s32.totalorder %s156_s5, %s156_s5 }
  0x35   : > { %p2007_p4 = scmp.ne.s32.totalorder %s156_s5, %s2006_s23  ;;  %p2015_p6 = scmp.lt.s32.totalorder %s2006_s23, %s2006_s23 }
  0x37   : > { %p2009_p3 = pnand %p2007_p4, %p1995_p8  ;;  %p2016_p13 = por %p2015_p6, %p2014_p11 }
  0x39   : > { %p2010_p12 = pneg %p2009_p3 }
  0x3b   : > { %p2017_p5 = pnand %p2016_p13, %p2010_p12 }
  0x3d   : > { %2020 = shalt.err (!%p2017_p5)
}
  0x3e   : > { %s2162_s30 = smov 128   ;;  %s2163_s7 = smov 8  }
  0x3f   : > { %1923 = dma.hbm_to_vmem [thread:$0]  (!%p2265_p2), %s3504_s0, 256, %s156_s5, [#allocation3], %s2162_s30, %s2162_s30, %s2163_s7  }
  0x40   : > { %p3505_p4 = scmp.ne.s32.totalorder %s3495_s25, 0  ;;  %p3506_p6 = scmp.lt.s32.totalorder %s2159_s18, 2 }
  0x41   : > { %s2021_s12 = scalar_lea.vmem %s2274_s9, 16  ;;  %p2029_p0 = scmp.lt.s32.totalorder %s2274_s9, %s2274_s9 }
  0x42   : > { %p2305_p5 = pnand %p3506_p6, %p3505_p4  ;;  %p2022_p11 = scmp.ne.s32.totalorder %s2274_s9, %s2021_s12 }
  0x43   : > { %p2030_p3 = scmp.lt.s32.totalorder %s2021_s12, %s2021_s12 }
  0x44   : > { %p2024_p12 = pnand %p2022_p11, %p1995_p8 }
  0x45   : > { %p2031_p7 = por %p2030_p3, %p2029_p0 }
  0x46   : > { %p2025_p13 = pneg %p2024_p12 }
  0x48   : > { %p2032_p9 = pnand %p2031_p7, %p2025_p13 }
  0x4a   : > { %2035 = shalt.err (!%p2032_p9)
}
  0x4b   : > { %s2164_s13 = smov [#allocation8]   ;;  %s3508_s3 = sld [smem:[#allocation39_spill]] }
  0x4c   : > { %1926 = dma.vmem_to_smem (!%p2265_p2), %s2274_s9, 16, %s2164_s13, [#allocation5]  }
  0x51   : > { %s180_s14 = sshll.u32 %s3508_s3, 4  ;;  %s181_s14 = int_to_ptr.vmem [resolvable:$true] %s180_s14 }
  0x52   : > { %s2036_s20 = scalar_lea.vmem %s181_s14, 16  ;;  %p2044_p6 = scmp.lt.s32.totalorder %s181_s14, %s181_s14 }
  0x53   : > { %p2037_p10 = scmp.ne.s32.totalorder %s181_s14, %s2036_s20  ;;  %p2045_p11 = scmp.lt.s32.totalorder %s2036_s20, %s2036_s20 }
  0x55   : > { %p2039_p1 = pnand %p2037_p10, %p1995_p8  ;;  %p2046_p12 = por %p2045_p11, %p2044_p6 }
  0x57   : > { %p2040_p4 = pneg %p2039_p1 }
  0x59   : > { %p2047_p13 = pnand %p2046_p12, %p2040_p4 }
  0x5b   : > { %2050 = shalt.err (!%p2047_p13)
}
  0x5c   : > { %s2165_s22 = smov [#allocation9]   ;;  %s191_s9 = sand.u32 1, %s2155_s17  }
  0x5d   : > { %1929 = dma.vmem_to_smem (!%p2265_p2), %s181_s14, 16, %s2165_s22, [#allocation10]  }
  0x5e   : > { %s1635_s23 = sshll.u32 %s2159_s18, 7  ;;  %s1634_s8 = sshll.u32 %s191_s9, 6 }
  0x5f   : > { %s3509_s1 = sld [smem:[#allocation37_spill]]  ;;  %s195_s25 = scalar_lea.vmem [#allocation6], %s1634_s8 }
  0x60   : > { %s201_s5 = sshll.u32 %s195_s25, 4  ;;  %s2336_s6 = scalar_lea.sflag [#allocation7], %s191_s9  ;;  %s2334_s5 = int_to_ptr.vmem [resolvable:$true] %s201_s5 }
  0x61   : > { %p2053_p8 = pneg %p2305_p5 }
  0x65   : > { %s2332_s13 = scalar_lea.hbm %s3509_s1, %s1635_s23  ;;  %s2056_s23 = scalar_lea.hbm %s3509_s1, 2048 }
  0x66   : > { %s2051_s20 = scalar_lea.hbm %s2332_s13, 1024  ;;  %p2057_p7 = scmp.lt.u32.totalorder %s2332_s13, %s3509_s1 }
  0x67   : > { %p2052_p2 = scmp.ne.s32.totalorder %s2332_s13, %s2051_s20  ;;  %p2058_p9 = scmp.lt.u32.totalorder %s2056_s23, %s2051_s20 }
  0x68   : > { %p2060_p1 = scmp.lt.u32.totalorder %s2051_s20, %s2332_s13 }
  0x69   : > { %p2054_p0 = pnand %p2053_p8, %p2052_p2  ;;  %p2059_p10 = por %p2058_p9, %p2057_p7 }
  0x6b   : > { %p2055_p3 = pneg %p2054_p0  ;;  %p2061_p4 = por %p2060_p1, %p2059_p10 }
  0x6d   : > { %p2062_p6 = pnand %p2061_p4, %p2055_p3 }
  0x6f   : > { %2065 = shalt.err (!%p2062_p6)
}
  0x70   : > { %s2066_s9 = scalar_lea.vmem %s2334_s5, 1024  ;;  %s2166_s8 = smov [#allocation6]  }
  0x71   : > { %p2067_p11 = scmp.ne.s32.totalorder %s2334_s5, %s2066_s9  ;;  %s2071_s25 = sshll.u32 %s2166_s8, 4  ;;  %s2072_s25 = int_to_ptr.vmem [resolvable:$false] %s2071_s25 }
  0x72   : > { %s2073_s14 = scalar_lea.vmem %s2072_s25, 2048  ;;  %p2074_p2 = scmp.lt.s32.totalorder %s2334_s5, %s2072_s25 }
  0x73   : > { %p2069_p12 = pnand %p2067_p11, %p2053_p8  ;;  %p2075_p0 = scmp.lt.s32.totalorder %s2073_s14, %s2066_s9 }
  0x75   : > { %p2070_p13 = pneg %p2069_p12  ;;  %p2076_p7 = por %p2075_p0, %p2074_p2 }
  0x77   : > { %p2077_p9 = pnand %p2076_p7, %p2070_p13 }
  0x79   : > { %2080 = shalt.err (!%p2077_p9)
}
  0x7a   : > { %s2167_s20 = smov 256   ;;  %p3510_p8 = scmp.ne.s32.totalorder %s3501_s29, 0 }
  0x7b   : > { %1933 = dma.hbm_to_vmem [thread:$0]  (!%p2305_p5), %s2332_s13, 1024, %s2334_s5, %s2336_s6, %s2167_s20, %s2162_s30, %s2163_s7  }
  0x7c   : > { %213 = sbr.rel (%p3510_p8) target bundleno = 656 (0x290), region = 36 }
  0x83   : > { %p3511_p3 = scmp.eq.s32.totalorder %s2218_s19, 0 }
  0x85   : > { %2126 = dma.done.wait (%p3511_p3), [#allocation3], 256   ;;  %p3512_p10 = pmov %p3511_p3 }
  0x86   : > { %s2373_s22 = sand.u32 1, %s2151_s16   ;;  %p3515_p5 = scmp.ne.s32.totalorder %s3496_s26, 0 }
  0x87   : > { %2128 = vsyncadd (%p3512_p10), [#allocation3], 4294967040  ;;  %3513 = sst [smem:[#allocation26_spill]] %s2373_s22  ;;  %s1638_s11 = sshll.u32 %s2373_s22, 6 }
  0x88   : > { %s220_s23 = scalar_lea.sflag [#allocation7], %s2373_s22  ;;  %s2377_s10 = scalar_lea.vmem [#allocation6], %s1638_s11 }
  0x89   : > { %3514 = sst [smem:[#allocation27_spill]] %s2377_s10 }
  0x8a   : > { %2130 = dma.done.wait (%p3515_p5), %s220_s23, 1024  }
  0x8b   : > { %2132 = vsyncadd (%p3515_p5), %s220_s23, 4294966272  ;;  %p3516_p1 = pmov %p3511_p3 }
  0x8d   : > { %2134 = dma.done.wait (%p3516_p1), [#allocation5], 16   ;;  %p3517_p4 = pmov %p3516_p1 }
  0x8e   : > { %p3518_p6 = pmov %p3516_p1 }
  0x8f   : > { %2136 = vsyncadd (%p3517_p4), [#allocation5], 4294967280 }
  0x90   : > { %2138 = dma.done.wait (%p3518_p6), [#allocation10], 16   ;;  %p3519_p11 = pmov %p3516_p1 }
  0x92   : > { %2140 = vsyncadd (%p3519_p11), [#allocation10], 4294967280 }
  0x93   : > { %236 = sfence }
  0x94   : > { %v2392_v0 = vld [vmem:[%s2377_s10] sm:$0xff]  ;;  %v2395_v1 = vld [vmem:[%s2377_s10 + $0x8] sm:$0xff]  ;;  %v257_v2 = vld [vmem:[#allocation2] sm:$0xff]  ;;  %vm263_vm0 = vcmask 130048   ;;  %s2441_s26 = sld [smem:[#allocation8]]  ;;  %s2445_s30 = sld [smem:[#allocation8 + $0x1]] }
  0x95   : > { %v1872_v3 = vpack.c.bf16 %v2395_v1, %v2392_v0  ;;  %1820 = vmatprep.mubr.msk.f32.mxu0 %vm263_vm0, %v257_v2  ;;  %v2401_v4 = vld [vmem:[%s2377_s10 + $0x10] sm:$0xff]  ;;  %v2404_v5 = vld [vmem:[%s2377_s10 + $0x18] sm:$0xff]  ;;  %v2409_v7 = vld [vmem:[%s2377_s10 + $0x20] sm:$0xff]  ;;  %v2437_v14 = vadd.f32 %v257_v2, %v257_v2  ;;  %s2443_s29 = sld [smem:[#allocation8 + $0x8]]  ;;  %s2447_s7 = sld [smem:[#allocation8 + $0x9]] }
  0x96   : > { %v1880_v6 = vpack.c.bf16 %v2404_v5, %v2401_v4  ;;  %v2412_v8 = vld [vmem:[%s2377_s10 + $0x28] sm:$0xff]  ;;  %v2414_v9 = vld [vmem:[#allocation2 + $0x8] sm:$0xff]  ;;  %v2419_v11 = vld [vmem:[%s2377_s10 + $0x30] sm:$0xff]  ;;  %s2449_s13 = sld [smem:[#allocation8 + $0x10]]  ;;  %s2451_s5 = sld [smem:[#allocation8 + $0x11]] }
  0x97   : > { %1873 = vmatprep.subr.bf16.mxu0 %v1872_v3  ;;  %v1888_v10 = vpack.c.bf16 %v2412_v8, %v2409_v7  ;;  %v2422_v12 = vld [vmem:[%s2377_s10 + $0x38] sm:$0xff]  ;;  %1827 = vmatprep.mubr.msk.f32.mxu1 %vm263_vm0, %v2437_v14  ;;  %s2455_s6 = sld [smem:[#allocation8 + $0x2]]  ;;  %s2459_s9 = sld [smem:[#allocation8 + $0x18]] }
  0x98   : > { %1875 = vmatpush3.bf16.msra.mxu0 %v1872_v3  ;;  %v1896_v13 = vpack.c.bf16 %v2422_v12, %v2419_v11  ;;  %s2457_s12 = sld [smem:[#allocation8 + $0xa]]  ;;  %s2461_s8 = sld [smem:[#allocation8 + $0x19]] }
  0x99   : > { %1881 = vmatprep.subr.bf16.mxu0 %v1880_v6  ;;  %s2465_s25 = sld [smem:[#allocation8 + $0x3]]  ;;  %s2475_s20 = sld [smem:[#allocation8 + $0x4]] }
  0x9a   : > { %v894_v15 = vstv %s2441_s26  ;;  %v970_v17 = vstv %s2445_s30  ;;  %s2467_s14 = sld [smem:[#allocation8 + $0xb]]  ;;  %s2477_s11 = sld [smem:[#allocation8 + $0xc]] }
  0x9b   : > { %1821 = vmatmul.mubr.msk.f32.vlgmr.msra.gmra.mrb[0].mxu0 %vm263_vm0, %v2414_v9  ;;  %v898_v16 = vstv %s2443_s29  ;;  %v974_v18 = vstv %s2447_s7  ;;  %v896_v19 = vmul.f32 %v894_v15, %v2395_v1  ;;  %s2480_s23 = sld [smem:[#allocation8 + $0x20]]  ;;  %s2482_s0 = sld [smem:[#allocation8 + $0x12]]  ;;  %v972_v22 = vmul.f32 %v970_v17, %v2395_v1 }
  0x9c   : > { %1883 = vmatpush3.bf16.msra.mxu0 %v1880_v6  ;;  %1834 = vmatprep.mubr.msk.f32.mxu0 %vm263_vm0, %v257_v2  ;;  %3520 = sst [smem:[#allocation28_spill]] %s2451_s5  ;;  %v900_v20 = vmul.f32 %v2404_v5, %v898_v16  ;;  %v904_v21 = vstv %s2449_s13  ;;  %v976_v23 = vmul.f32 %v2404_v5, %v974_v18  ;;  %v980_v24 = vstv %s2451_s5  ;;  %s2491_s1 = sld [smem:[#allocation8 + $0x21]] }
  0x9d   : > { %1889 = vmatprep.subr.bf16.mxu0 %v1888_v10  ;;  %3521 = sst [smem:[#allocation29_spill]] %s2459_s9  ;;  %s2493_s2 = sld [smem:[#allocation8 + $0x1a]]  ;;  %v906_v26 = vmul.f32 %v2412_v8, %v904_v21  ;;  %v982_v27 = vmul.f32 %v2412_v8, %v980_v24  ;;  %v1047_v28 = vstv %s2455_s6  ;;  %v910_v29 = vstv %s2459_s9 }
  0x9e   : > { %3522 = sst [smem:[#allocation30_spill]] %s2461_s8  ;;  %s2495_s3 = sld [smem:[#allocation8 + $0x13]]  ;;  %v902_v25 = vadd.f32 %v900_v20, %v896_v19  ;;  %v978_v30 = vadd.f32 %v976_v23, %v972_v22  ;;  %v986_v31 = vstv %s2461_s8  ;;  %v1051_v32 = vstv %s2457_s12 }
  0x9f   : > { %1835 = vmatmul.mubr.msk.f32.vlgmr.msra.gmra.mrb[2].mxu0 %vm263_vm0, %v2414_v9  ;;  %s2497_s24 = sld [smem:[#allocation8 + $0x14]]  ;;  %s2502_s17 = sld [smem:[#allocation8 + $0x5]]  ;;  %v1124_v33 = vstv %s2465_s25  ;;  %v1049_v36 = vmul.f32 %v1047_v28, %v2395_v1  ;;  %v1201_v37 = vstv %s2475_s20  ;;  %v912_v39 = vmul.f32 %v2422_v12, %v910_v29 }
  0xa0   : > { %1891 = vmatpush3.bf16.msra.mxu0 %v1888_v10  ;;  %1848 = vmatprep.mubr.msk.f32.mxu0 %vm263_vm0, %v257_v2  ;;  %s2504_s16 = sld [smem:[#allocation8 + $0xd]]  ;;  %s2510_s21 = sld [smem:[#allocation8 + $0x6]]  ;;  %v1128_v34 = vstv %s2467_s14  ;;  %v908_v35 = vadd.f32 %v906_v26, %v902_v25  ;;  %v1205_v38 = vstv %s2477_s11  ;;  %v988_v41 = vmul.f32 %v2422_v12, %v986_v31 }
  0xa1   : > { %1897 = vmatprep.subr.bf16.mxu0 %v1896_v13  ;;  %3523 = sst [smem:[#allocation31_spill]] %s2480_s23  ;;  %s2517_s28 = sld [smem:[#allocation8 + $0x1b]]  ;;  %v916_v40 = vstv %s2480_s23  ;;  %v1053_v42 = vmul.f32 %v2404_v5, %v1051_v32  ;;  %v984_v43 = vadd.f32 %v982_v27, %v978_v30  ;;  %v1057_v44 = vstv %s2482_s0 }
  0xa2   : > { %3524 = sst [smem:[#allocation32_spill]] %s2482_s0  ;;  %s2512_s18 = sld [smem:[#allocation8 + $0xe]]  ;;  %v1126_v45 = vmul.f32 %v1124_v33, %v2395_v1  ;;  %v1130_v46 = vmul.f32 %v2404_v5, %v1128_v34  ;;  %v992_v47 = vstv %s2491_s1  ;;  %v1203_v49 = vmul.f32 %v1201_v37, %v2395_v1 }
  0xa3   : > { %1849 = vmatmul.mubr.msk.f32.vlgmr.msra.gmra.mrb[4].mxu0 %vm263_vm0, %v2414_v9  ;;  %3525 = sst [smem:[#allocation33_spill]] %s2491_s1  ;;  %s2519_s15 = sld [smem:[#allocation8 + $0x1c]]  ;;  %v1207_v50 = vmul.f32 %v2404_v5, %v1205_v38  ;;  %v1063_v51 = vstv %s2493_s2  ;;  %v1055_v55 = vadd.f32 %v1053_v42, %v1049_v36  ;;  %v1059_v56 = vmul.f32 %v2412_v8, %v1057_v44 }
  0xa4   : > { %1899 = vmatpush3.bf16.msra.mxu0 %v1896_v13  ;;  %1862 = vmatprep.mubr.msk.f32.mxu0 %vm263_vm0, %v257_v2  ;;  %3526 = sst [smem:[#allocation34_spill]] %s2495_s3  ;;  %s2528_s27 = sld [smem:[#allocation8 + $0x15]]  ;;  %v1134_v48 = vstv %s2495_s3  ;;  %v1132_v59 = vadd.f32 %v1130_v46, %v1126_v45  ;;  %v2600_v10 = vadd.f32 %v912_v39, %v908_v35  ;;  %v1065_v23 = vmul.f32 %v2422_v12, %v1063_v51 }
  0xa5   : > { %3527 = sst [smem:[#allocation35_spill]] %s2497_s24  ;;  %s2542_s19 = sld [smem:[#allocation8 + $0x16]]  ;;  %v1211_v52 = vstv %s2497_s24  ;;  %v1278_v53 = vstv %s2502_s17  ;;  %v1136_v60 = vmul.f32 %v2412_v8, %v1134_v48  ;;  %v1209_v63 = vadd.f32 %v1207_v50, %v1203_v49 }
  0xa6   : > { %s2540_s4 = sld [smem:[#allocation8 + $0x22]]  ;;  %s2553_s22 = sld [smem:[#allocation8 + $0x23]]  ;;  %v1282_v54 = vstv %s2504_s16  ;;  %v1355_v57 = vstv %s2510_s21  ;;  %v1213_v2 = vmul.f32 %v2412_v8, %v1211_v52  ;;  %v1280_v3 = vmul.f32 %v1278_v53, %v2395_v1 }
  0xa7   : > { %1863 = vmatmul.mubr.msk.f32.vlgmr.msra.gmra.mrb[6].mxu0 %vm263_vm0, %v2414_v9  ;;  %s2561_s10 = sld [smem:[#allocation8 + $0x1d]]  ;;  %s2567_s1 = sld [smem:[#allocation8 + $0x7]]  ;;  %v1140_v61 = vstv %s2517_s28  ;;  %v1284_v6 = vmul.f32 %v2404_v5, %v1282_v54  ;;  %v1357_v19 = vmul.f32 %v1355_v57, %v2395_v1  ;;  %v1061_v22 = vadd.f32 %v1059_v56, %v1055_v55 }
  0xa8   : > { %s2569_s23 = sld [smem:[#allocation8 + $0xf]]  ;;  %s2574_s8 = sld [smem:[#allocation8 + $0x24]]  ;;  %v1359_v58 = vstv %s2512_s18  ;;  %v2616_v27 = vadd.f32 %v988_v41, %v984_v43  ;;  %v1138_v30 = vadd.f32 %v1136_v60, %v1132_v59  ;;  %v1142_v35 = vmul.f32 %v2422_v12, %v1140_v61 }
  0xa9   : > { %s2578_s5 = sld [smem:[#allocation8 + $0x1e]]  ;;  %v1217_v62 = vstv %s2519_s15  ;;  %s2585_s0 = sld [smem:[#allocation8 + $0x17]]  ;;  %v1361_v20 = vmul.f32 %v2404_v5, %v1359_v58  ;;  %v1215_v39 = vadd.f32 %v1213_v2, %v1209_v63  ;;  %v1286_v42 = vadd.f32 %v1284_v6, %v1280_v3 }
  0xaa   : > { %s2587_s9 = sld [smem:[#allocation8 + $0x1f]]  ;;  %s2598_s3 = sld [smem:[#allocation8 + $0x25]]  ;;  %v1288_v13 = vstv %s2528_s27  ;;  %v1219_v36 = vmul.f32 %v2422_v12, %v1217_v62  ;;  %v2633_v55 = vadd.f32 %v1065_v23, %v1061_v22  ;;  %v2638_v63 = vadd.f32 %v1142_v35, %v1138_v30 }
  0xab   : > { %s2609_s24 = sld [smem:[#allocation8 + $0x26]]  ;;  %v1365_v26 = vstv %s2542_s19  ;;  %v1290_v45 = vmul.f32 %v2412_v8, %v1288_v13  ;;  %v1363_v49 = vadd.f32 %v1361_v20, %v1357_v19  ;;  %s2688_s26 = sld [smem:[#allocation8 + $0x27]] }
  0xac   : > { %v1069_v25 = vstv %s2540_s4  ;;  %v1367_v41 = vmul.f32 %v2412_v8, %v1365_v26  ;;  %v2647_v19 = vadd.f32 %v1219_v36, %v1215_v39  ;;  %v895_v39 = vmul.f32 %v894_v15, %v2392_v0  ;;  %s2699_s30 = sld [smem:[#allocation8 + $0x28]]  ;;  %s2713_s6 = sld [smem:[#allocation8 + $0x29]] }
  0xad   : > { %v1294_v46 = vstv %s2561_s10  ;;  %v1432_v43 = vstv %s2567_s1  ;;  %v2652_v30 = vadd.f32 %v1290_v45, %v1286_v42  ;;  %v899_v42 = vmul.f32 %v2401_v4, %v898_v16  ;;  %s2715_s12 = sld [smem:[#allocation8 + $0x2a]]  ;;  %s2726_s25 = sld [smem:[#allocation8 + $0x2b]] }
  0xae   : > { %v1436_v50 = vstv %s2569_s23  ;;  %v2643_v2 = vmul.f32 %v2422_v12, %v1294_v46  ;;  %v1434_v22 = vmul.f32 %v1432_v43, %v2395_v1  ;;  %v2654_v35 = vadd.f32 %v1367_v41, %v1363_v49  ;;  %s2728_s16 = sld [smem:[#allocation8 + $0x2c]]  ;;  %s2736_s21 = sld [smem:[#allocation8 + $0x2d]] }
  0xaf   : > { %v1371_v60 = vstv %s2578_s5  ;;  %v1442_v3 = vstv %s2585_s0  ;;  %v1438_v23 = vmul.f32 %v2404_v5, %v1436_v50  ;;  %v971_v45 = vmul.f32 %v970_v17, %v2392_v0  ;;  %s2738_s18 = sld [smem:[#allocation8 + $0x2e]]  ;;  %s2745_s20 = sld [smem:[#allocation8 + $0x2f]] }
  0xb0   : > { %v1448_v6 = vstv %s2587_s9  ;;  %v1300_v20 = vstv %s2598_s3  ;;  %v2659_v59 = vmul.f32 %v2422_v12, %v1371_v60  ;;  %v1444_v36 = vmul.f32 %v2412_v8, %v1442_v3  ;;  %s2747_s11 = sld [smem:[#allocation8 + $0x30]]  ;;  %s2755_s23 = sld [smem:[#allocation8 + $0x31]] }
  0xb1   : > { %v1377_v56 = vstv %s2609_s24  ;;  %v2668_v5 = vmul.f32 %v2422_v12, %v1448_v6  ;;  %v975_v49 = vmul.f32 %v2401_v4, %v974_v18  ;;  %v1048_v8 = vmul.f32 %v1047_v28, %v2392_v0  ;;  %s2757_s1 = sld [smem:[#allocation8 + $0x32]]  ;;  %s2765_s29 = sld [smem:[#allocation8 + $0x33]] }
  0xb2   : > { %v1052_v12 = vmul.f32 %v2401_v4, %v1051_v32  ;;  %v1440_v41 = vadd.f32 %v1438_v23, %v1434_v22  ;;  %v905_v15 = vmul.f32 %v2409_v7, %v904_v21  ;;  %v1125_v16 = vmul.f32 %v1124_v33, %v2392_v0  ;;  %s2767_s7 = sld [smem:[#allocation8 + $0x34]]  ;;  %s2775_s27 = sld [smem:[#allocation8 + $0x35]] }
  0xb3   : > { %v1129_v17 = vmul.f32 %v2401_v4, %v1128_v34  ;;  %v1202_v18 = vmul.f32 %v1201_v37, %v2392_v0  ;;  %v1206_v28 = vmul.f32 %v2401_v4, %v1205_v38  ;;  %v1279_v32 = vmul.f32 %v1278_v53, %v2392_v0  ;;  %s2777_s19 = sld [smem:[#allocation8 + $0x36]]  ;;  %s2782_s13 = sld [smem:[#allocation8 + $0x37]] }
  0xb4   : > { %v1283_v21 = vmul.f32 %v2401_v4, %v1282_v54  ;;  %v901_v33 = vadd.f32 %v899_v42, %v895_v39  ;;  %v911_v34 = vmul.f32 %v2419_v11, %v910_v29  ;;  %v1356_v37 = vmul.f32 %v1355_v57, %v2392_v0  ;;  %s2784_s2 = sld [smem:[#allocation8 + $0x38]]  ;;  %s2792_s28 = sld [smem:[#allocation8 + $0x39]] }
  0xb5   : > { %v1360_v38 = vmul.f32 %v2401_v4, %v1359_v58  ;;  %v977_v53 = vadd.f32 %v975_v49, %v971_v45  ;;  %v981_v54 = vmul.f32 %v2409_v7, %v980_v24  ;;  %v1054_v22 = vadd.f32 %v1052_v12, %v1048_v8  ;;  %s2794_s17 = sld [smem:[#allocation8 + $0x3a]]  ;;  %s2802_s0 = sld [smem:[#allocation8 + $0x3b]] }
  0xb6   : > { %v1058_v29 = vmul.f32 %v2409_v7, %v1057_v44  ;;  %v1131_v57 = vadd.f32 %v1129_v17, %v1125_v16  ;;  %v1135_v58 = vmul.f32 %v2409_v7, %v1134_v48  ;;  %v1433_v23 = vmul.f32 %v1432_v43, %v2392_v0  ;;  %s2804_s15 = sld [smem:[#allocation8 + $0x3c]]  ;;  %s2813_s10 = sld [smem:[#allocation8 + $0x3d]] }
  0xb7   : > { %v1437_v39 = vmul.f32 %v2401_v4, %v1436_v50  ;;  %v1208_v24 = vadd.f32 %v1206_v28, %v1202_v18  ;;  %v1212_v44 = vmul.f32 %v2409_v7, %v1211_v52  ;;  %v1285_v42 = vadd.f32 %v1283_v21, %v1279_v32  ;;  %s2815_s5 = sld [smem:[#allocation8 + $0x3e]]  ;;  %s2936_s3 = sld [smem:[#allocation8 + $0x3f]] }
  0xb8   : > { %v1289_v45 = vmul.f32 %v2409_v7, %v1288_v13  ;;  %v1446_v4 = vadd.f32 %v1444_v36, %v1440_v41  ;;  %v987_v48 = vmul.f32 %v2419_v11, %v986_v31  ;;  %v1362_v43 = vadd.f32 %v1360_v38, %v1356_v37  ;;  %s3097_s4 = sld [smem:[#allocation8 + $0x40]]  ;;  %s3099_s24 = sld [smem:[#allocation8 + $0x41]] }
  0xb9   : > { %v1366_v50 = vmul.f32 %v2409_v7, %v1365_v26  ;;  %v907_v52 = vadd.f32 %v905_v15, %v901_v33  ;;  %v983_v13 = vadd.f32 %v981_v54, %v977_v53  ;;  %v1064_v49 = vmul.f32 %v2419_v11, %v1063_v51  ;;  %s3153_s9 = sld [smem:[#allocation8 + $0x5c]]  ;;  %s3155_s14 = sld [smem:[#allocation8 + $0x5d]] }
  0xba   : > { %v1141_v36 = vmul.f32 %v2419_v11, %v1140_v61  ;;  %v1060_v31 = vadd.f32 %v1058_v29, %v1054_v22  ;;  %v1137_v26 = vadd.f32 %v1135_v58, %v1131_v57  ;;  %v1439_v8 = vadd.f32 %v1437_v39, %v1433_v23 }
  0xbb   : > { %v1443_v12 = vmul.f32 %v2409_v7, %v1442_v3  ;;  %v1214_v51 = vadd.f32 %v1212_v44, %v1208_v24  ;;  %v1218_v61 = vmul.f32 %v2419_v11, %v1217_v62  ;;  %v1291_v41 = vadd.f32 %v1289_v45, %v1285_v42 }
  0xbc   : > { %v1295_v15 = vmul.f32 %v2419_v11, %v1294_v46  ;;  %v1298_v7 = vadd.f32 %v2643_v2, %v2652_v30  ;;  %v1454_v3 = vstv %s2688_s26  ;;  %v1368_v16 = vadd.f32 %v1366_v50, %v1362_v43  ;;  %s3105_s26 = sld [smem:[#allocation8 + $0x44]] }
  0xbd   : > { %v1372_v17 = vmul.f32 %v2419_v11, %v1371_v60  ;;  %v1375_v62 = vadd.f32 %v2659_v59, %v2654_v35  ;;  %v1452_v46 = vadd.f32 %v2668_v5, %v1446_v4  ;;  %v2809_v2 = vadd.f32 %v911_v34, %v907_v52 }
  0xbe   : > { %v2811_v30 = vadd.f32 %v987_v48, %v983_v13  ;;  %v1066_v60 = vadd.f32 %v1064_v49, %v1060_v31  ;;  %v1143_v18 = vadd.f32 %v1141_v36, %v1137_v26  ;;  %v1445_v28 = vadd.f32 %v1443_v12, %v1439_v8 }
  0xbf   : > { %v1449_v59 = vmul.f32 %v2419_v11, %v1448_v6  ;;  %v1220_v35 = vadd.f32 %v1218_v61, %v1214_v51  ;;  %v1297_v5 = vadd.f32 %v1295_v15, %v1291_v41  ;;  %v922_v32 = vstv %s2699_s30  ;;  %s3107_s30 = sld [smem:[#allocation8 + $0x45]] }
  0xc0   : > { %v998_v21 = vstv %s2713_s6  ;;  %v1374_v33 = vadd.f32 %v1372_v17, %v1368_v16  ;;  %v1075_v34 = vstv %s2715_s12  ;;  %v1152_v37 = vstv %s2726_s25  ;;  %s3109_s6 = sld [smem:[#allocation8 + $0x46]]  ;;  %s3111_s12 = sld [smem:[#allocation8 + $0x47]] }
  0xc1   : > { %v1229_v38 = vstv %s2728_s16  ;;  %v1306_v53 = vstv %s2736_s21  ;;  %v1383_v54 = vstv %s2738_s18  ;;  %v1460_v11 = vstv %s2745_s20  ;;  %s3113_s25 = sld [smem:[#allocation8 + $0x48]]  ;;  %s3115_s16 = sld [smem:[#allocation8 + $0x49]] }
  0xc2   : > { %v2830_v6 = vadd.f32 %v2414_v9, %v2414_v9  ;;  %v1451_v22 = vadd.f32 %v1449_v59, %v1445_v28  ;;  %v928_v29 = vstv %s2747_s11  ;;  %v1004_v57 = vstv %s2755_s23  ;;  %s3117_s21 = sld [smem:[#allocation8 + $0x4a]]  ;;  %s3119_s18 = sld [smem:[#allocation8 + $0x4b]] }
  0xc3   : > { %v1081_v58 = vstv %s2757_s1  ;;  %v1158_v23 = vstv %s2765_s29  ;;  %v1235_v39 = vstv %s2767_s7  ;;  %v1312_v24 = vstv %s2775_s27  ;;  %s3121_s20 = sld [smem:[#allocation8 + $0x4c]]  ;;  %s3123_s11 = sld [smem:[#allocation8 + $0x4d]] }
  0xc4   : > { %v1389_v44 = vstv %s2777_s19  ;;  %v1466_v42 = vstv %s2782_s13  ;;  %v3536_v26 = vstv %s2553_s22  ;;  %v3537_v51 = vstv %s2574_s8  ;;  %s3125_s23 = sld [smem:[#allocation8 + $0x4e]]  ;;  %s3127_s1 = sld [smem:[#allocation8 + $0x4f]] }
  0xc5   : > { %s3129_s29 = sld [smem:[#allocation8 + $0x50]]  ;;  %s3131_s7 = sld [smem:[#allocation8 + $0x51]] }
  0xc6   : > { %s3133_s27 = sld [smem:[#allocation8 + $0x52]]  ;;  %s3135_s19 = sld [smem:[#allocation8 + $0x53]] }
  0xc7   : > { %s3137_s13 = sld [smem:[#allocation8 + $0x54]] }
 0x16e   : > { %v1822_v48 = vpop.f32.mrb[0].mxu0 }
 0x16f   : > { %v918_v49 = vmul.f32 %v1822_v48, %v916_v40  ;;  %v994_v36 = vmul.f32 %v1822_v48, %v992_v47  ;;  %v1071_v31 = vmul.f32 %v1822_v48, %v1069_v25  ;;  %v1148_v8 = vmul.f32 %v1822_v48, %v3536_v26  ;;  %v336_v12 = vpop.f32.mrb[1].mxu0 }
 0x170   : > { %v1225_v61 = vmul.f32 %v1822_v48, %v3537_v51  ;;  %v1302_v41 = vmul.f32 %v1822_v48, %v1300_v20  ;;  %v1379_v15 = vmul.f32 %v1822_v48, %v1377_v56  ;;  %v1456_v16 = vmul.f32 %v1822_v48, %v1454_v3 }
 0x171   : > { %v920_v17 = vadd.f32 %v918_v49, %v2600_v10  ;;  %v996_v28 = vadd.f32 %v994_v36, %v2616_v27  ;;  %v1073_v59 = vadd.f32 %v1071_v31, %v2633_v55  ;;  %v1150_v26 = vadd.f32 %v1148_v8, %v2638_v63 }
 0x172   : > { %v1227_v51 = vadd.f32 %v1225_v61, %v2647_v19  ;;  %v1304_v13 = vadd.f32 %v1302_v41, %v1298_v7  ;;  %v1381_v52 = vadd.f32 %v1379_v15, %v1375_v62  ;;  %v1458_v50 = vadd.f32 %v1456_v16, %v1452_v46  ;;  %v1836_v43 = vpop.f32.mrb[2].mxu0 }
 0x173   : > { %v917_v4 = vmul.f32 %v916_v40, %v336_v12  ;;  %v993_v45 = vmul.f32 %v992_v47, %v336_v12  ;;  %v1070_v10 = vmul.f32 %v1069_v25, %v336_v12  ;;  %v3538_v49 = vstv %s2553_s22  ;;  %v497_v27 = vpop.f32.mrb[3].mxu0  ;;  %s3101_s22 = sld [smem:[#allocation8 + $0x42]] }
 0x174   : > { %v1147_v9 = vmul.f32 %v3538_v49, %v336_v12  ;;  %v3539_v36 = vstv %s2574_s8  ;;  %v1301_v63 = vmul.f32 %v1300_v20, %v336_v12  ;;  %v1378_v19 = vmul.f32 %v1377_v56, %v336_v12  ;;  %s3103_s8 = sld [smem:[#allocation8 + $0x43]] }
 0x175   : > { %v1224_v55 = vmul.f32 %v3539_v36, %v336_v12  ;;  %v1455_v7 = vmul.f32 %v1454_v3, %v336_v12  ;;  %v919_v40 = vadd.f32 %v917_v4, %v2809_v2  ;;  %v2886_v47 = vadd.f32 %v993_v45, %v2811_v30 }
 0x176   : > { %v2888_v25 = vadd.f32 %v1070_v10, %v1066_v60  ;;  %v2890_v62 = vadd.f32 %v1147_v9, %v1143_v18  ;;  %v2894_v20 = vadd.f32 %v1301_v63, %v1297_v5  ;;  %v2896_v56 = vadd.f32 %v1378_v19, %v1374_v33  ;;  %v1850_v31 = vpop.f32.mrb[4].mxu0 }
 0x177   : > { %v2892_v46 = vadd.f32 %v1224_v55, %v1220_v35  ;;  %v2898_v3 = vadd.f32 %v1455_v7, %v1451_v22  ;;  %v1876_v2 = vpack.c.bf16 %v1822_v48, %v336_v12  ;;  %v924_v4 = vmul.f32 %v1836_v43, %v922_v32  ;;  %v652_v45 = vpop.f32.mrb[5].mxu0 }
 0x178   : > { %v1000_v30 = vmul.f32 %v1836_v43, %v998_v21  ;;  %v1077_v60 = vmul.f32 %v1836_v43, %v1075_v34  ;;  %v1154_v18 = vmul.f32 %v1836_v43, %v1152_v37  ;;  %v1231_v35 = vmul.f32 %v1836_v43, %v1229_v38 }
 0x179   : > { %v1308_v5 = vmul.f32 %v1836_v43, %v1306_v53  ;;  %v1385_v33 = vmul.f32 %v1836_v43, %v1383_v54  ;;  %1877 = vmatprep.subr.bf16.mxu1 %v1876_v2  ;;  %v926_v22 = vadd.f32 %v924_v4, %v920_v17  ;;  %v1462_v8 = vmul.f32 %v1836_v43, %v1460_v11 }
 0x17a   : > { %v1002_v9 = vadd.f32 %v1000_v30, %v996_v28  ;;  %v1079_v48 = vadd.f32 %v1077_v60, %v1073_v59  ;;  %v2916_v12 = vadd.f32 %v1154_v18, %v1150_v26  ;;  %v2918_v61 = vadd.f32 %v1231_v35, %v1227_v51  ;;  %1879 = vmatpush3.bf16.msra.mxu1 %v1876_v2  ;;  %v2924_v16 = vpop.f32.mrb[6].mxu0 }
 0x17b   : > { %v2920_v41 = vadd.f32 %v1308_v5, %v1304_v13  ;;  %v2922_v15 = vadd.f32 %v1385_v33, %v1381_v52  ;;  %v2926_v17 = vadd.f32 %v1462_v8, %v1458_v50  ;;  %v923_v28 = vmul.f32 %v922_v32, %v497_v27  ;;  %v2934_v26 = vpop.f32.mrb[7].mxu0 }
 0x17c   : > { %v999_v59 = vmul.f32 %v998_v21, %v497_v27  ;;  %v1076_v13 = vmul.f32 %v1075_v34, %v497_v27  ;;  %v1153_v52 = vmul.f32 %v1152_v37, %v497_v27  ;;  %v1230_v50 = vmul.f32 %v1229_v38, %v497_v27 }
 0x17d   : > { %v2944_v51 = vmul.f32 %v1306_v53, %v497_v27  ;;  %v2948_v32 = vmul.f32 %v1383_v54, %v497_v27  ;;  %v2952_v21 = vmul.f32 %v1460_v11, %v497_v27  ;;  %1828 = vmatmul.mubr.msk.f32.vlgmr.msra.gmra.mrb[0].mxu1 %vm263_vm0, %v2830_v6  ;;  %v1884_v34 = vpack.c.bf16 %v1836_v43, %v497_v27 }
 0x17e   : > { %v930_v37 = vmul.f32 %v1850_v31, %v928_v29  ;;  %v1006_v38 = vmul.f32 %v1850_v31, %v1004_v57  ;;  %v1083_v53 = vmul.f32 %v1850_v31, %v1081_v58  ;;  %v1160_v54 = vmul.f32 %v1850_v31, %v1158_v23  ;;  %1841 = vmatprep.mubr.msk.f32.mxu1 %vm263_vm0, %v2437_v14 }
 0x17f   : > { %v1237_v11 = vmul.f32 %v1850_v31, %v1235_v39  ;;  %v1314_v10 = vmul.f32 %v1850_v31, %v1312_v24  ;;  %1885 = vmatprep.subr.bf16.mxu1 %v1884_v34  ;;  %v1391_v43 = vmul.f32 %v1850_v31, %v1389_v44  ;;  %v2974_v49 = vmul.f32 %v1850_v31, %v1466_v42 }
 0x180   : > { %v929_v27 = vmul.f32 %v928_v29, %v652_v45  ;;  %v1005_v36 = vmul.f32 %v1004_v57, %v652_v45  ;;  %1887 = vmatpush3.bf16.msra.mxu1 %v1884_v34  ;;  %v1082_v55 = vmul.f32 %v1081_v58, %v652_v45  ;;  %v1159_v63 = vmul.f32 %v1158_v23, %v652_v45 }
 0x181   : > { %v1236_v19 = vmul.f32 %v1235_v39, %v652_v45  ;;  %v1313_v7 = vmul.f32 %v1312_v24, %v652_v45  ;;  %v1390_v2 = vmul.f32 %v1389_v44, %v652_v45  ;;  %v1467_v4 = vmul.f32 %v1466_v42, %v652_v45 }
 0x182   : > { %v1892_v30 = vpack.c.bf16 %v1850_v31, %v652_v45  ;;  %v925_v29 = vadd.f32 %v923_v28, %v919_v40  ;;  %v932_v60 = vadd.f32 %v930_v37, %v926_v22  ;;  %v3540_v57 = vstv %s2784_s2  ;;  %s3139_s2 = sld [smem:[#allocation8 + $0x55]] }
 0x183   : > { %v935_v18 = vmul.f32 %v3540_v57, %v2934_v26  ;;  %v3541_v58 = vmov %v3540_v57  ;;  %v1001_v39 = vadd.f32 %v999_v59, %v2886_v47  ;;  %1842 = vmatmul.mubr.msk.f32.vlgmr.msra.gmra.mrb[2].mxu1 %vm263_vm0, %v2830_v6  ;;  %v1008_v44 = vadd.f32 %v1006_v38, %v1002_v9 }
 0x184   : > { %v936_v23 = vmul.f32 %v2924_v16, %v3541_v58  ;;  %1893 = vmatprep.subr.bf16.mxu1 %v1892_v30  ;;  %v931_v24 = vadd.f32 %v929_v27, %v925_v29  ;;  %v3542_v42 = vstv %s2792_s28  ;;  %v1472_v31 = vstv %s2936_s3  ;;  %1855 = vmatprep.mubr.msk.f32.mxu1 %vm263_vm0, %v2437_v14  ;;  %s3141_s28 = sld [smem:[#allocation8 + $0x56]] }
 0x185   : > { %v1011_v40 = vmul.f32 %v3542_v42, %v2934_v26  ;;  %1895 = vmatpush3.bf16.msra.mxu1 %v1892_v30  ;;  %v1007_v35 = vadd.f32 %v1005_v36, %v1001_v39  ;;  %v3543_v5 = vmov %v3542_v42  ;;  %v1078_v47 = vadd.f32 %v1076_v13, %v2888_v25  ;;  %s3189_s3 = sld [smem:[#allocation8 + $0x5e]] }
 0x186   : > { %v3005_v45 = vadd.f32 %v936_v23, %v932_v60  ;;  %v1012_v33 = vmul.f32 %v2924_v16, %v3543_v5  ;;  %v3011_v22 = vadd.f32 %v935_v18, %v931_v24  ;;  %v1085_v8 = vadd.f32 %v1083_v53, %v1079_v48 }
 0x187   : > { %v3544_v9 = vstv %s2794_s17  ;;  %v3021_v37 = vadd.f32 %v1011_v40, %v1007_v35  ;;  %v1084_v27 = vadd.f32 %v1082_v55, %v1078_v47  ;;  %v1155_v25 = vadd.f32 %v1153_v52, %v2890_v62  ;;  %s3143_s17 = sld [smem:[#allocation8 + $0x57]] }
 0x188   : > { %v1088_v28 = vmul.f32 %v3544_v9, %v2934_v26  ;;  %v3545_v59 = vmov %v3544_v9  ;;  %v3023_v38 = vadd.f32 %v1012_v33, %v1008_v44  ;;  %v1162_v48 = vadd.f32 %v1160_v54, %v2916_v12  ;;  %1856 = vmatmul.mubr.msk.f32.vlgmr.msra.gmra.mrb[4].mxu1 %vm263_vm0, %v2830_v6 }
 0x189   : > { %v1089_v34 = vmul.f32 %v2924_v16, %v3545_v59  ;;  %v3546_v53 = vstv %s2802_s0  ;;  %v1161_v55 = vadd.f32 %v1159_v63, %v1155_v25  ;;  %v1232_v62 = vadd.f32 %v1230_v50, %v2892_v46  ;;  %1869 = vmatprep.mubr.msk.f32.mxu1 %vm263_vm0, %v2437_v14  ;;  %s3145_s0 = sld [smem:[#allocation8 + $0x58]] }
 0x18a   : > { %v1165_v36 = vmul.f32 %v3546_v53, %v2934_v26  ;;  %v3547_v30 = vmov %v3546_v53  ;;  %v3037_v60 = vadd.f32 %v1088_v28, %v1084_v27  ;;  %v1239_v52 = vadd.f32 %v1237_v11, %v2918_v61 }
 0x18b   : > { %v3026_v13 = vadd.f32 %v1089_v34, %v1085_v8  ;;  %v1166_v29 = vmul.f32 %v2924_v16, %v3547_v30  ;;  %v3548_v54 = vstv %s2804_s15  ;;  %v1309_v63 = vadd.f32 %v2944_v51, %v2894_v20  ;;  %s3147_s15 = sld [smem:[#allocation8 + $0x59]] }
 0x18c   : > { %v1242_v57 = vmul.f32 %v3548_v54, %v2934_v26  ;;  %v3549_v18 = vmov %v3548_v54  ;;  %v3053_v23 = vadd.f32 %v1165_v36, %v1161_v55  ;;  %v1238_v46 = vadd.f32 %v1236_v19, %v1232_v62 }
 0x18d   : > { %v3043_v12 = vadd.f32 %v1166_v29, %v1162_v48  ;;  %v1243_v58 = vmul.f32 %v2924_v16, %v3549_v18  ;;  %v1316_v61 = vadd.f32 %v1314_v10, %v2920_v41  ;;  %v3550_v50 = vstv %s2813_s10  ;;  %s3149_s10 = sld [smem:[#allocation8 + $0x5a]] }
 0x18e   : > { %v1319_v14 = vmul.f32 %v3550_v50, %v2934_v26  ;;  %v1315_v39 = vadd.f32 %v1313_v7, %v1309_v63  ;;  %v3551_v24 = vmov %v3550_v50  ;;  %v1386_v42 = vadd.f32 %v2948_v32, %v2896_v56 }
 0x18f   : > { %v3059_v11 = vadd.f32 %v1243_v58, %v1239_v52  ;;  %v1320_v44 = vmul.f32 %v2924_v16, %v3551_v24  ;;  %v3066_v40 = vadd.f32 %v1242_v57, %v1238_v46  ;;  %v1393_v20 = vadd.f32 %v1391_v43, %v2922_v15 }
 0x190   : > { %v3552_v51 = vstv %s2815_s5  ;;  %v3075_v35 = vadd.f32 %v1319_v14, %v1315_v39  ;;  %v1392_v7 = vadd.f32 %v1390_v2, %v1386_v42  ;;  %v1463_v33 = vadd.f32 %v2952_v21, %v2898_v3  ;;  %s3151_s5 = sld [smem:[#allocation8 + $0x5b]] }
 0x191   : > { %v1396_v19 = vmul.f32 %v3552_v51, %v2934_v26  ;;  %v3553_v41 = vmov %v3552_v51  ;;  %v3077_v5 = vadd.f32 %v1320_v44, %v1316_v61  ;;  %v1470_v56 = vadd.f32 %v2974_v49, %v2926_v17 }
 0x192   : > { %v1397_v10 = vmul.f32 %v2924_v16, %v3553_v41  ;;  %v1473_v15 = vmul.f32 %v1472_v31, %v2934_v26  ;;  %v1474_v32 = vmul.f32 %v2924_v16, %v1472_v31  ;;  %v1469_v8 = vadd.f32 %v1467_v4, %v1463_v33 }
 0x193   : > { %v3087_v43 = vadd.f32 %v1396_v19, %v1392_v7  ;;  %v1900_v9 = vpack.c.bf16 %v2924_v16, %v2934_v26  ;;  %v1016_v3 = vstv %s3099_s24  ;;  %v1093_v16 = vstv %s3101_s22  ;;  %s3193_s24 = sld [smem:[#allocation8 + $0x5f]]  ;;  %s3195_s22 = sld [smem:[#allocation9 + $0x1]] }
 0x194   : > { %v3081_v47 = vadd.f32 %v1397_v10, %v1393_v20  ;;  %v3091_v28 = vadd.f32 %v1474_v32, %v1470_v56  ;;  %v3093_v2 = vadd.f32 %v1473_v15, %v1469_v8  ;;  %v1170_v17 = vstv %s3103_s8  ;;  %s3554_s8 = sld [smem:[#allocation27_spill]] }
 0x195   : > { %1901 = vmatprep.subr.bf16.mxu1 %v1900_v9  ;;  %v1247_v26 = vstv %s3105_s26  ;;  %v1324_v21 = vstv %s3107_s30  ;;  %v1401_v49 = vstv %s3109_s6  ;;  %v1478_v4 = vstv %s3111_s12  ;;  %s3255_s26 = sld [smem:[#allocation9 + $0x2]]  ;;  %s3257_s30 = sld [smem:[#allocation9 + $0x3]] }
 0x196   : > { %1903 = vmatpush3.bf16.msra.mxu1 %v1900_v9  ;;  %v946_v31 = vstv %s3113_s25  ;;  %v1022_v59 = vstv %s3115_s16  ;;  %v1099_v34 = vstv %s3117_s21  ;;  %v1176_v27 = vstv %s3119_s18  ;;  %s3267_s6 = sld [smem:[#allocation9 + $0x4]]  ;;  %s3269_s12 = sld [smem:[#allocation9 + $0x5]] }
 0x197   : > { %v1253_v25 = vstv %s3121_s20  ;;  %v1330_v48 = vstv %s3123_s11  ;;  %v1407_v53 = vstv %s3125_s23  ;;  %v1484_v36 = vstv %s3127_s1  ;;  %s3279_s25 = sld [smem:[#allocation9 + $0x6]]  ;;  %s3281_s16 = sld [smem:[#allocation9 + $0x7]] }
 0x198   : > { %v952_v30 = vstv %s3129_s29  ;;  %v1028_v29 = vstv %s3131_s7  ;;  %v1105_v55 = vstv %s3133_s27  ;;  %v1182_v62 = vstv %s3135_s19  ;;  %s3555_s21 = sld [smem:[#allocation26_spill]]  ;;  %s3559_s20 = sld [smem:[#allocation21_spill]] }
 0x199   : > { %1870 = vmatmul.mubr.msk.f32.vlgmr.msra.gmra.mrb[6].mxu1 %vm263_vm0, %v2830_v6  ;;  %v940_v6 = vstv %s3097_s4  ;;  %v1259_v54 = vstv %s3137_s13  ;;  %v1336_v57 = vstv %s3139_s2  ;;  %v1413_v18 = vstv %s3141_s28  ;;  %s3191_s4 = sld [smem:[#allocation9]]  ;;  %s3563_s27 = sld [smem:[#allocation40_spill]] }
 0x19a   : > { %v1490_v58 = vstv %s3143_s17  ;;  %v958_v61 = vstv %s3145_s0  ;;  %v1034_v50 = vstv %s3147_s15  ;;  %v1111_v14 = vstv %s3149_s10  ;;  %s3564_s13 = sld [smem:[#allocation24_spill]]  ;;  %s2168_s17 = smov [#allocation11]  }
 0x19b   : > { %s2085_s0 = sshll.u32 %s2168_s17, 4  ;;  %s2086_s0 = int_to_ptr.vmem [resolvable:$false] %s2085_s0 }
 0x19c   : > { %s2087_s15 = scalar_lea.vmem %s2086_s0, 4096 }
 0x19e   : > { %s1641_s18 = sshll.u32 %s3555_s21, 7  ;;  %s1781_s23 = sshll.u32 %s3559_s20, 7 }
 0x19f   : > { %s3348_s11 = scalar_lea.vmem [#allocation11], %s1641_s18  ;;  %s3379_s19 = scalar_lea.hbm %s3563_s27, %s1781_s23 }
 0x1a0   : > { %s1521_s1 = sshll.u32 %s3348_s11, 4  ;;  %s1509_s2 = scalar_lea.sflag [#allocation4], %s3555_s21  ;;  %s3389_s1 = int_to_ptr.vmem [resolvable:$true] %s1521_s1 }
 0x1a1   : > { %s2081_s28 = scalar_lea.vmem %s3389_s1, 2048  ;;  %p3565_p13 = scmp.ne.s32.totalorder %s3564_s13, 0 }
 0x1a2   : > { %p2082_p12 = scmp.ne.s32.totalorder %s3389_s1, %s2081_s28  ;;  %p2088_p7 = scmp.lt.s32.totalorder %s3389_s1, %s2086_s0 }
 0x1a3   : > { %p2089_p9 = scmp.lt.s32.totalorder %s2087_s15, %s2081_s28 }
 0x1a4   : > { %p2083_p2 = pnand %p2082_p12, %p3565_p13 }
 0x1a5   : > { %p2090_p8 = por %p2089_p9, %p2088_p7 }
 0x1a6   : > { %p2084_p0 = pneg %p2083_p2 }
 0x1a8   : > { %p2091_p3 = pnand %p2090_p8, %p2084_p0 }
 0x250   : > { %v1829_v52 = vpop.f32.mrb[0].mxu1 }
 0x251   : > { %v427_v63 = vsub.f32 %v1829_v52, %v2395_v1  ;;  %v417_v46 = vpop.f32.mrb[1].mxu1 }
 0x252   : > { %v426_v39 = vsub.f32 %v417_v46, %v2392_v0 }
 0x253   : > { %v942_v20 = vmul.f32 %v940_v6, %v427_v63  ;;  %v1018_v51 = vmul.f32 %v1016_v3, %v427_v63  ;;  %v1095_v19 = vmul.f32 %v1093_v16, %v427_v63  ;;  %v1172_v41 = vmul.f32 %v1170_v17, %v427_v63 }
 0x254   : > { %v1249_v1 = vmul.f32 %v1247_v26, %v427_v63  ;;  %v1326_v10 = vmul.f32 %v1324_v21, %v427_v63  ;;  %v1403_v7 = vmul.f32 %v1401_v49, %v427_v63  ;;  %v1480_v33 = vmul.f32 %v1478_v4, %v427_v63 }
 0x255   : > { %v944_v0 = vadd.f32 %v942_v20, %v3005_v45  ;;  %v1020_v56 = vadd.f32 %v1018_v51, %v3023_v38  ;;  %v1097_v15 = vadd.f32 %v1095_v19, %v3026_v13  ;;  %v1174_v32 = vadd.f32 %v1172_v41, %v3043_v12 }
 0x256   : > { %v1251_v8 = vadd.f32 %v1249_v1, %v3059_v11  ;;  %v1328_v9 = vadd.f32 %v1326_v10, %v3077_v5  ;;  %v1405_v52 = vadd.f32 %v1403_v7, %v3081_v47  ;;  %v1482_v46 = vadd.f32 %v1480_v33, %v3091_v28  ;;  %v1843_v42 = vpop.f32.mrb[2].mxu1 }
 0x257   : > { %v941_v63 = vmul.f32 %v940_v6, %v426_v39  ;;  %v1017_v44 = vmul.f32 %v1016_v3, %v426_v39  ;;  %v1094_v24 = vmul.f32 %v1093_v16, %v426_v39  ;;  %v1171_v45 = vmul.f32 %v1170_v17, %v426_v39  ;;  %v572_v20 = vpop.f32.mrb[3].mxu1 }
 0x258   : > { %v1248_v38 = vmul.f32 %v1247_v26, %v426_v39  ;;  %v1325_v13 = vmul.f32 %v1324_v21, %v426_v39  ;;  %v1402_v12 = vmul.f32 %v1401_v49, %v426_v39  ;;  %v1479_v11 = vmul.f32 %v1478_v4, %v426_v39  ;;  %v1988_v49 = vld [vmem:[%s3554_s8 + $0x10] sm:$0xff] }
 0x259   : > { %v943_v5 = vadd.f32 %v941_v63, %v3011_v22  ;;  %v1019_v47 = vadd.f32 %v1017_v44, %v3021_v37  ;;  %v1096_v28 = vadd.f32 %v1094_v24, %v3037_v60  ;;  %v1173_v6 = vadd.f32 %v1171_v45, %v3053_v23  ;;  %v1987_v37 = vld [vmem:[%s3554_s8 + $0x18] sm:$0xff]  ;;  %v1990_v24 = vld [vmem:[%s3554_s8 + $0x20] sm:$0xff] }
 0x25a   : > { %v1250_v3 = vadd.f32 %v1248_v38, %v3066_v40  ;;  %v1327_v16 = vadd.f32 %v1325_v13, %v3075_v35  ;;  %v1404_v17 = vadd.f32 %v1402_v12, %v3087_v43  ;;  %v1481_v26 = vadd.f32 %v1479_v11, %v3093_v2  ;;  %v1989_v43 = vld [vmem:[%s3554_s8 + $0x28] sm:$0xff] }
 0x25b   : > { %v1857_v22 = vpop.f32.mrb[4].mxu1  ;;  %v582_v21 = vsub.f32 %v1843_v42, %v1987_v37  ;;  %v964_v23 = vstv %s3191_s4  ;;  %v1419_v40 = vstv %s3189_s3  ;;  %v1496_v35 = vstv %s3193_s24 }
 0x25c   : > { %v727_v60 = vpop.f32.mrb[5].mxu1  ;;  %v581_v4 = vsub.f32 %v572_v20, %v1988_v49  ;;  %v737_v39 = vsub.f32 %v1857_v22, %v1989_v43  ;;  %v1040_v44 = vstv %s3195_s22 }
 0x25d   : > { %v3220_v2 = vsub.f32 %v727_v60, %v1990_v24  ;;  %v948_v51 = vmul.f32 %v946_v31, %v582_v21  ;;  %v1024_v42 = vmul.f32 %v1022_v59, %v582_v21  ;;  %v1101_v19 = vmul.f32 %v1099_v34, %v582_v21 }
 0x25e   : > { %v1178_v41 = vmul.f32 %v1176_v27, %v582_v21  ;;  %v1255_v1 = vmul.f32 %v1253_v25, %v582_v21  ;;  %v1332_v10 = vmul.f32 %v1330_v48, %v582_v21  ;;  %v1409_v7 = vmul.f32 %v1407_v53, %v582_v21 }
 0x25f   : > { %v1486_v33 = vmul.f32 %v1484_v36, %v582_v21  ;;  %v950_v63 = vadd.f32 %v948_v51, %v944_v0  ;;  %v1026_v45 = vadd.f32 %v1024_v42, %v1020_v56  ;;  %v1103_v20 = vadd.f32 %v1101_v19, %v1097_v15 }
 0x260   : > { %v1180_v38 = vadd.f32 %v1178_v41, %v1174_v32  ;;  %v1257_v13 = vadd.f32 %v1255_v1, %v1251_v8  ;;  %v1334_v12 = vadd.f32 %v1332_v10, %v1328_v9  ;;  %v1411_v11 = vadd.f32 %v1409_v7, %v1405_v52 }
 0x261   : > { %v1488_v22 = vadd.f32 %v1486_v33, %v1482_v46  ;;  %v947_v37 = vmul.f32 %v946_v31, %v581_v4  ;;  %v1023_v60 = vmul.f32 %v1022_v59, %v581_v4  ;;  %v1100_v49 = vmul.f32 %v1099_v34, %v581_v4 }
 0x262   : > { %v1177_v43 = vmul.f32 %v1176_v27, %v581_v4  ;;  %v1254_v21 = vmul.f32 %v1253_v25, %v581_v4  ;;  %v1331_v0 = vmul.f32 %v1330_v48, %v581_v4  ;;  %v1408_v56 = vmul.f32 %v1407_v53, %v581_v4 }
 0x263   : > { %v1485_v15 = vmul.f32 %v1484_v36, %v581_v4  ;;  %v949_v32 = vadd.f32 %v947_v37, %v943_v5  ;;  %v1025_v31 = vadd.f32 %v1023_v60, %v1019_v47  ;;  %v1102_v59 = vadd.f32 %v1100_v49, %v1096_v28  ;;  %v1992_v60 = vld [vmem:[%s3554_s8 + $0x30] sm:$0xff] }
 0x264   : > { %v1179_v34 = vadd.f32 %v1177_v43, %v1173_v6  ;;  %v1256_v27 = vadd.f32 %v1254_v21, %v1250_v3  ;;  %v1333_v8 = vadd.f32 %v1331_v0, %v1327_v16  ;;  %v1410_v9 = vadd.f32 %v1408_v56, %v1404_v17 }
 0x265   : > { %v1487_v25 = vadd.f32 %v1485_v15, %v1481_v26  ;;  %v954_v48 = vmul.f32 %v952_v30, %v737_v39  ;;  %v1030_v53 = vmul.f32 %v1028_v29, %v737_v39  ;;  %v1107_v36 = vmul.f32 %v1105_v55, %v737_v39 }
 0x266   : > { %v1184_v52 = vmul.f32 %v1182_v62, %v737_v39  ;;  %v1261_v46 = vmul.f32 %v1259_v54, %v737_v39  ;;  %v1338_v5 = vmul.f32 %v1336_v57, %v737_v39  ;;  %v1415_v47 = vmul.f32 %v1413_v18, %v737_v39 }
 0x267   : > { %v1492_v28 = vmul.f32 %v1490_v58, %v737_v39  ;;  %v956_v6 = vadd.f32 %v954_v48, %v950_v63  ;;  %v1032_v3 = vadd.f32 %v1030_v53, %v1026_v45  ;;  %v1109_v16 = vadd.f32 %v1107_v36, %v1103_v20 }
 0x268   : > { %v1186_v17 = vadd.f32 %v1184_v52, %v1180_v38  ;;  %v1263_v26 = vadd.f32 %v1261_v46, %v1257_v13  ;;  %v1340_v4 = vadd.f32 %v1338_v5, %v1334_v12  ;;  %v1417_v24 = vadd.f32 %v1415_v47, %v1411_v11 }
 0x269   : > { %v1494_v51 = vadd.f32 %v1492_v28, %v1488_v22  ;;  %v953_v39 = vmul.f32 %v952_v30, %v3220_v2  ;;  %v1029_v19 = vmul.f32 %v1028_v29, %v3220_v2  ;;  %v1106_v41 = vmul.f32 %v1105_v55, %v3220_v2 }
 0x26a   : > { %v1183_v1 = vmul.f32 %v1182_v62, %v3220_v2  ;;  %v1260_v7 = vmul.f32 %v1259_v54, %v3220_v2  ;;  %v1337_v30 = vmul.f32 %v1336_v57, %v3220_v2  ;;  %v1414_v29 = vmul.f32 %v1413_v18, %v3220_v2  ;;  %v1991_v18 = vld [vmem:[%s3554_s8 + $0x38] sm:$0xff] }
 0x26b   : > { %v1491_v55 = vmul.f32 %v1490_v58, %v3220_v2  ;;  %v955_v62 = vadd.f32 %v953_v39, %v949_v32  ;;  %v1031_v33 = vadd.f32 %v1029_v19, %v1025_v31  ;;  %v1108_v63 = vadd.f32 %v1106_v41, %v1102_v59 }
 0x26c   : > { %v1871_v42 = vpop.f32.mrb[6].mxu1  ;;  %v1185_v45 = vadd.f32 %v1183_v1, %v1179_v34  ;;  %v1262_v54 = vadd.f32 %v1260_v7, %v1256_v27  ;;  %v1339_v20 = vadd.f32 %v1337_v30, %v1333_v8  ;;  %v1416_v57 = vadd.f32 %v1414_v29, %v1410_v9 }
 0x26d   : > { %v882_v10 = vpop.f32.mrb[7].mxu1  ;;  %v1493_v38 = vadd.f32 %v1491_v55, %v1487_v25  ;;  %v892_v13 = vsub.f32 %v1871_v42, %v1991_v18  ;;  %v1117_v58 = vstv %s3255_s26  ;;  %v1194_v2 = vstv %s3257_s30 }
 0x26e   : > { %v1271_v12 = vstv %s3267_s6  ;;  %v1348_v11 = vstv %s3269_s12  ;;  %v1425_v22 = vstv %s3279_s25  ;;  %v1502_v37 = vstv %s3281_s16 }
 0x26f   : > { %v891_v49 = vsub.f32 %v882_v10, %v1992_v60  ;;  %v960_v43 = vmul.f32 %v958_v61, %v892_v13  ;;  %v1036_v21 = vmul.f32 %v1034_v50, %v892_v13  ;;  %v1113_v0 = vmul.f32 %v1111_v14, %v892_v13 }
 0x270   : > { %v3556_v56 = vstv %s3151_s5  ;;  %v3557_v32 = vstv %s3153_s9  ;;  %v3558_v59 = vstv %s3155_s14  ;;  %v1421_v27 = vmul.f32 %v1419_v40, %v892_v13 }
 0x271   : > { %v1190_v15 = vmul.f32 %v3556_v56, %v892_v13  ;;  %v1267_v31 = vmul.f32 %v3557_v32, %v892_v13  ;;  %v1344_v34 = vmul.f32 %v3558_v59, %v892_v13  ;;  %v1498_v8 = vmul.f32 %v1496_v35, %v892_v13 }
 0x272   : > { %v962_v9 = vadd.f32 %v960_v43, %v956_v6  ;;  %v1038_v25 = vadd.f32 %v1036_v21, %v1032_v3  ;;  %v1115_v48 = vadd.f32 %v1113_v0, %v1109_v16  ;;  %v1423_v46 = vadd.f32 %v1421_v27, %v1417_v24 }
 0x273   : > { %v1192_v53 = vadd.f32 %v1190_v15, %v1186_v17  ;;  %v1269_v36 = vadd.f32 %v1267_v31, %v1263_v26  ;;  %v1346_v52 = vadd.f32 %v1344_v34, %v1340_v4  ;;  %v1500_v5 = vadd.f32 %v1498_v8, %v1494_v51 }
 0x274   : > { %v966_v47 = vadd.f32 %v964_v23, %v962_v9  ;;  %v1042_v28 = vadd.f32 %v1040_v44, %v1038_v25  ;;  %v1119_v42 = vadd.f32 %v1117_v58, %v1115_v48  ;;  %v1427_v17 = vadd.f32 %v1425_v22, %v1423_v46 }
 0x275   : > { %v1196_v6 = vadd.f32 %v1194_v2, %v1192_v53  ;;  %v1273_v3 = vadd.f32 %v1271_v12, %v1269_v36  ;;  %v1350_v16 = vadd.f32 %v1348_v11, %v1346_v52  ;;  %v1504_v26 = vadd.f32 %v1502_v37, %v1500_v5 }
 0x276   : > { %968 = vst [vmem:[%s3348_s11 + $0x8] sm:$0xff] %v966_v47  ;;  %1689 = vst [vmem:[%s3348_s11 + $0x18] sm:$0xff] %v1042_v28  ;;  %v959_v4 = vmul.f32 %v958_v61, %v891_v49  ;;  %v1035_v24 = vmul.f32 %v1034_v50, %v891_v49  ;;  %v1112_v51 = vmul.f32 %v1111_v14, %v891_v49  ;;  %v3560_v39 = vmov %v3556_v56 }
 0x277   : > { %1704 = vst [vmem:[%s3348_s11 + $0x28] sm:$0xff] %v1119_v42  ;;  %1719 = vst [vmem:[%s3348_s11 + $0x38] sm:$0xff] %v1196_v6  ;;  %v1189_v19 = vmul.f32 %v3560_v39, %v891_v49  ;;  %v3561_v41 = vmov %v3557_v32  ;;  %v3562_v10 = vmov %v3558_v59  ;;  %v1420_v61 = vmul.f32 %v1419_v40, %v891_v49 }
 0x278   : > { %1734 = vst [vmem:[%s3348_s11 + $0x48] sm:$0xff] %v1273_v3  ;;  %1749 = vst [vmem:[%s3348_s11 + $0x58] sm:$0xff] %v1350_v16  ;;  %v1266_v1 = vmul.f32 %v3561_v41, %v891_v49  ;;  %v1343_v7 = vmul.f32 %v3562_v10, %v891_v49  ;;  %v1497_v50 = vmul.f32 %v1496_v35, %v891_v49 }
 0x279   : > { %1764 = vst [vmem:[%s3348_s11 + $0x68] sm:$0xff] %v1427_v17  ;;  %1779 = vst [vmem:[%s3348_s11 + $0x78] sm:$0xff] %v1504_v26  ;;  %v961_v14 = vadd.f32 %v959_v4, %v955_v62  ;;  %v1037_v30 = vadd.f32 %v1035_v24, %v1031_v33  ;;  %v1114_v29 = vadd.f32 %v1112_v51, %v1108_v63 }
 0x27a   : > { %v1191_v55 = vadd.f32 %v1189_v19, %v1185_v45  ;;  %v1268_v18 = vadd.f32 %v1266_v1, %v1262_v54  ;;  %v1345_v13 = vadd.f32 %v1343_v7, %v1339_v20  ;;  %v1422_v60 = vadd.f32 %v1420_v61, %v1416_v57 }
 0x27b   : > { %v1499_v40 = vadd.f32 %v1497_v50, %v1493_v38  ;;  %v965_v35 = vadd.f32 %v964_v23, %v961_v14  ;;  %v1041_v62 = vadd.f32 %v1040_v44, %v1037_v30  ;;  %v1118_v33 = vadd.f32 %v1117_v58, %v1114_v29 }
 0x27c   : > { %v1195_v63 = vadd.f32 %v1194_v2, %v1191_v55  ;;  %v1272_v45 = vadd.f32 %v1271_v12, %v1268_v18  ;;  %v1349_v54 = vadd.f32 %v1348_v11, %v1345_v13  ;;  %v1426_v20 = vadd.f32 %v1425_v22, %v1422_v60 }
 0x27d   : > { %v1503_v23 = vadd.f32 %v1502_v37, %v1499_v40  ;;  %967 = vst [vmem:[%s3348_s11] sm:$0xff] %v965_v35  ;;  %1688 = vst [vmem:[%s3348_s11 + $0x10] sm:$0xff] %v1041_v62 }
 0x27e   : > { %1703 = vst [vmem:[%s3348_s11 + $0x20] sm:$0xff] %v1118_v33  ;;  %1718 = vst [vmem:[%s3348_s11 + $0x30] sm:$0xff] %v1195_v63 }
 0x27f   : > { %1733 = vst [vmem:[%s3348_s11 + $0x40] sm:$0xff] %v1272_v45  ;;  %1748 = vst [vmem:[%s3348_s11 + $0x50] sm:$0xff] %v1349_v54 }
 0x280   : > { %1763 = vst [vmem:[%s3348_s11 + $0x60] sm:$0xff] %v1426_v20  ;;  %1778 = vst [vmem:[%s3348_s11 + $0x70] sm:$0xff] %v1503_v23 }
 0x281   : > { %2094 = shalt.err (!%p2091_p3)
}
 0x282   : > { %s2095_s10 = scalar_lea.hbm %s3379_s19, 2048  ;;  %s2099_s14 = scalar_lea.hbm %s3563_s27, 4096 }
 0x283   : > { %p2096_p10 = scmp.ne.s32.totalorder %s3379_s19, %s2095_s10  ;;  %p2100_p4 = scmp.lt.u32.totalorder %s3379_s19, %s3563_s27 }
 0x284   : > { %p2101_p6 = scmp.lt.u32.totalorder %s2099_s14, %s2095_s10  ;;  %p2103_p12 = scmp.lt.u32.totalorder %s2095_s10, %s3379_s19 }
 0x285   : > { %p2097_p5 = pnand %p2096_p10, %p3565_p13 }
 0x286   : > { %p2102_p11 = por %p2101_p6, %p2100_p4 }
 0x287   : > { %p2098_p1 = pneg %p2097_p5 }
 0x288   : > { %p2104_p2 = por %p2103_p12, %p2102_p11 }
 0x28a   : > { %p2105_p0 = pnand %p2104_p2, %p2098_p1 }
 0x28c   : > { %2108 = shalt.err (!%p2105_p0)
}
 0x28d   : > { %s2169_s24 = smov 128   ;;  %s2170_s22 = smov 256  }
 0x28e   : > { %s2171_s8 = smov 8  }
 0x28f   : > { %1918 = dma.vmem_to_hbm [thread:$0]  (%p3565_p13), %s3389_s1, 2048, %s3379_s19, %s1509_s2, %s2169_s24, %s2170_s22, %s2171_s8  }
 0x290 PF: > { %s3566_s26 = sld [smem:[#allocation17_spill]]  ;;  %s3567_s30 = sld [smem:[#allocation25_spill]] }
 0x291   : > { %s3568_s6 = sld [smem:[#allocation20_spill]] }
 0x296   : > { %s1536_s12 = sand.u32 1, %s3566_s26   ;;  %p3569_p7 = scmp.ne.s32.totalorder %s3567_s30, 0 }
 0x297   : > { %p3570_p9 = scmp.ge.s32.totalorder %s3568_s6, 2  ;;  %s1537_s25 = scalar_lea.sflag [#allocation4], %s1536_s12 }
 0x299   : > { %p1935_p8 = pnand %p3570_p9, %p3569_p7 }
 0x29b   : > { %2142 = dma.done.wait (!%p1935_p8), %s1537_s25, 2048  }
 0x29c   : > { %2144 = vsyncadd (!%p1935_p8), %s1537_s25, 4294965248  ;;  %s3571_s18 = sld [smem:[#allocation22_spill]]  ;;  %s3572_s15 = sld [smem:[#allocation18_spill]] }
 0x29d   : > { %s3573_s16 = sld [smem:[#allocation19_spill]]  ;;  %s3574_s17 = sld [smem:[#allocation23_spill]] }
 0x2a2   : > { %p20_p3 = scmp.ge.s32.totalorder %s3571_s18, 4  }
 0x2a4   :  { %22 = sbr.rel (!%p20_p3) target bundleno = 14 (0xe), region = 105 }
 0x2ab   :  { %1542 = vsyncpa [#allocation3], 1 }
 0x2ac   :  { %1544 = vsyncpa [#allocation3 + $0x1], 1 }
 0x2ad   :  { %1545 = vsyncpa [#allocation7], 1 }
 0x2ae   :  { %1547 = vsyncpa [#allocation7 + $0x1], 1 }
 0x2af   :  { %1548 = vsyncpa [#allocation4], 1 }
 0x2b0   :  { %1550 = vsyncpa [#allocation4 + $0x1], 1 }
 0x2b1   :  { %1551 = vsyncpa [#allocation5], 1 }
 0x2b2   :  { %1553 = vsyncpa [#allocation5 + $0x1], 1 }
 0x2b3   :  { %1554 = vsyncpa [#allocation10], 1 }

</bundles_post_ra>
